<compile_context>
chip_gen: v7x
topology: tpu7x:2x2x1
jax: 0.10.0
libtpu: 0.0.40
codegen_flags: <defaults>
</compile_context>

<pallas_src>
import functools

import jax
import jax.numpy as jnp
from jax import lax
from jax.experimental import pallas as pl
from jax.experimental.pallas import tpu as pltpu

# Small hyperparameters consistent with DecoderRNN's structure
CNN_EMBED_DIM = 48     # RNN_input_size
H_RNN_LAYERS = 3
H_RNN = 32
H_FC_DIM = 16
NUM_CLASSES = 8
DROP_P = 0.3           # dropout is identity at inference time


def _decoder_rnn_kernel(x_ref, wih0_ref, whh0_ref, b0_ref,
                        wih_r_ref, whh_r_ref, b_r_ref,
                        fc1w_ref, fc1b_ref, fc2w_ref, fc2b_ref,
                        out_ref,
                        *, T, H, n_layers):
    """Wavefront-pipelined multi-layer LSTM recurrence + FC head."""
    B = x_ref.shape[0] // T          # padded batch (sublane multiple)
    L = n_layers

    # Layer-0 input-to-hidden precompute: one (T*B, D) @ (D, 4H) matmul +
    # bias, hoisted off the recurrence chain entirely.
    ih0 = jnp.dot(x_ref[...], wih0_ref[...],
                  preferred_element_type=jnp.float32) + b0_ref[...]   # (T*B,4H)

    # Hoist per-layer weight / bias loads out of the wave loop.
    whh0 = whh0_ref[...]                                   # (H, 4H)
    wih_r = [wih_r_ref[l] for l in range(L - 1)]           # (H, 4H) each
    whh_r = [whh_r_ref[l] for l in range(L - 1)]
    b_r = [b_r_ref[l] for l in range(L - 1)]               # (1, 4H) each

    def cell(gates, c_prev):
        # Two full-width EUP passes (one sigmoid, one tanh over (B, 4H)),
        # then slice the i/f/g/o lanes.
        sg = jax.nn.sigmoid(gates)
        th = jnp.tanh(gates)
        i = sg[:, 0 * H:1 * H]
        f = sg[:, 1 * H:2 * H]
        g = th[:, 2 * H:3 * H]
        o = sg[:, 3 * H:4 * H]
        c_new = f * c_prev + i * g
        h_new = o * jnp.tanh(c_new)
        return h_new, c_new

    zeros = jnp.zeros((B, H), jnp.float32)   # zero init state == PyTorch None
    h = [zeros] * L
    c = [zeros] * L

    # Wavefront: layer l executes timestep t = w - l at wave w.  Updates are
    # deferred to the end of the wave, so layer l reads h[l-1] as produced at
    # wave w-1 (i.e. h_{l-1}(t)) and all per-wave layer-steps are mutually
    # independent -> up to L parallel matmul/EUP/VPU chains in flight.
    for w in range(T + L - 1):               # fully unrolled (static)
        new_h = list(h)
        new_c = list(c)
        for l in range(L):
            t = w - l
            if not (0 <= t < T):
                continue
            if l == 0:
                gates = ih0[t * B:(t + 1) * B, :] + jnp.dot(
                    h[0], whh0, preferred_element_type=jnp.float32)
            else:
                # two independent MXU pushes; see header note on why this is
                # used instead of a fused [h_{l-1}; h_l] @ [Wih; Whh] push.
                gates = (jnp.dot(h[l - 1], wih_r[l - 1],
                                 preferred_element_type=jnp.float32)
                         + jnp.dot(h[l], whh_r[l - 1],
                                   preferred_element_type=jnp.float32)
                         + b_r[l - 1])
            new_h[l], new_c[l] = cell(gates, c[l])
        h, c = new_h, new_c

    # fc head: RNN_out[:, -1, :] == last layer's final h
    z = jnp.dot(h[L - 1], fc1w_ref[...],
                preferred_element_type=jnp.float32) + fc1b_ref[...]
    z = jnp.maximum(z, 0.0)                                       # relu
    # TODO(synk): dropout is identity here (eval semantics); training-mode
    # stochastic masking would need pltpu.prng_seed + prng_random_bits.
    out_ref[...] = jnp.dot(z, fc2w_ref[...],
                           preferred_element_type=jnp.float32) + fc2b_ref[...]


def decoder_rnn_forward(x_rnn, params):
    B, T, D = x_rnn.shape
    H = params["whh0"].shape[0]
    C = params["fc2w"].shape[1]
    L = params["wih_r"].shape[0] + 1

    # time-major, pad batch to a sublane multiple (8), flatten to (T*B_pad, D).
    # NOTE: for real workloads, pack up to B_pad independent sequences per
    # call (and/or grid over batch tiles with dimension_semantics="parallel")
    # instead of padding with zero rows — the kernel is latency-bound, so the
    # extra real rows are free throughput.
    B_pad = max(8, ((B + 7) // 8) * 8)
    x_tm = jnp.transpose(x_rnn, (1, 0, 2)).astype(jnp.float32)    # (T, B, D)
    if B_pad != B:
        x_tm = jnp.pad(x_tm, ((0, 0), (0, B_pad - B), (0, 0)))
    x_flat = x_tm.reshape(T * B_pad, D)                           # (T*B_pad, D)

    kernel = functools.partial(_decoder_rnn_kernel, T=T, H=H, n_layers=L)
    vmem = pl.BlockSpec(memory_space=pltpu.MemorySpace.VMEM)

    out = pl.pallas_call(
        kernel,
        out_shape=jax.ShapeDtypeStruct((B_pad, C), jnp.float32),
        in_specs=[vmem] * 11,
        out_specs=vmem,
    )(x_flat,
      params["wih0"], params["whh0"], params["b0"],
      params["wih_r"], params["whh_r"], params["b_r"],
      params["fc1w"], params["fc1b"], params["fc2w"], params["fc2b"])

    return out[:B]                     # drop padded batch rows


def init_params(key, D, H, L, F, C):
    """Deterministic init mimicking PyTorch's uniform(-1/sqrt(H), 1/sqrt(H))."""
    k_lstm = 1.0 / jnp.sqrt(jnp.float32(H))
    keys = iter(jax.random.split(key, 6 * L + 6))

    def u(shape, bound):
        return jax.random.uniform(next(keys), shape, jnp.float32,
                                  minval=-bound, maxval=bound)

    # gate order along the 4H axis: [i, f, g, o] (PyTorch convention);
    # weights stored transposed for `x @ W` matmuls.
    wih0 = u((D, 4 * H), k_lstm)
    whh0 = u((H, 4 * H), k_lstm)
    b0 = (u((1, 4 * H), k_lstm) + u((1, 4 * H), k_lstm))  # b_ih + b_hh

    wih_r = jnp.stack([u((H, 4 * H), k_lstm) for _ in range(L - 1)])
    whh_r = jnp.stack([u((H, 4 * H), k_lstm) for _ in range(L - 1)])
    b_r = jnp.stack([u((1, 4 * H), k_lstm) + u((1, 4 * H), k_lstm)
                     for _ in range(L - 1)])

    k_fc1 = 1.0 / jnp.sqrt(jnp.float32(H))
    k_fc2 = 1.0 / jnp.sqrt(jnp.float32(F))
    fc1w = u((H, F), k_fc1)
    fc1b = u((1, F), k_fc1)
    fc2w = u((F, C), k_fc2)
    fc2b = u((1, C), k_fc2)

    return dict(wih0=wih0, whh0=whh0, b0=b0,
                wih_r=wih_r, whh_r=whh_r, b_r=b_r,
                fc1w=fc1w, fc1b=fc1b, fc2w=fc2w, fc2b=fc2b)


def decoder_rnn_ref(x, params):
    """Pure-JAX reference for correctness checking."""
    B, T, D = x.shape
    H = params["whh0"].shape[0]
    L = params["wih_r"].shape[0] + 1

    def layer(seq, wih, whh, b):
        def step(carry, x_t):
            h, c = carry
            gates = x_t @ wih + h @ whh + b[0]
            i = jax.nn.sigmoid(gates[:, 0 * H:1 * H])
            f = jax.nn.sigmoid(gates[:, 1 * H:2 * H])
            g = jnp.tanh(gates[:, 2 * H:3 * H])
            o = jax.nn.sigmoid(gates[:, 3 * H:4 * H])
            c = f * c + i * g
            h = o * jnp.tanh(c)
            return (h, c), h
        init = (jnp.zeros((B, H), jnp.float32), jnp.zeros((B, H), jnp.float32))
        (h, _), ys = lax.scan(step, init, jnp.transpose(seq, (1, 0, 2)))
        return jnp.transpose(ys, (1, 0, 2)), h

    seq, h = layer(x, params["wih0"], params["whh0"], params["b0"])
    for l in range(1, L):
        seq, h = layer(seq, params["wih_r"][l - 1],
                       params["whh_r"][l - 1], params["b_r"][l - 1])
    z = jnp.maximum(h @ params["fc1w"] + params["fc1b"][0], 0.0)
    return z @ params["fc2w"] + params["fc2b"][0]


if __name__ == "__main__":
    key = jax.random.PRNGKey(0)
    k_x, k_p = jax.random.split(key)

    B, T = 2, 8
    x_rnn = jax.random.normal(k_x, (B, T, CNN_EMBED_DIM), jnp.float32)
    params = init_params(k_p, CNN_EMBED_DIM, H_RNN, H_RNN_LAYERS,
                         H_FC_DIM, NUM_CLASSES)

    out = decoder_rnn_forward(x_rnn, params)
    out = jax.block_until_ready(out)

    ref = decoder_rnn_ref(x_rnn, params)
    assert out.shape == (B, NUM_CLASSES)
    assert jnp.allclose(out, ref, atol=1e-4, rtol=1e-4), (
        f"mismatch: max abs err {jnp.max(jnp.abs(out - ref))}")

    print("KERNEL_OK")
</pallas_src>

<mosaic_0001>
module attributes {stable_mosaic.version = 11 : i64} {
  func.func @_decoder_rnn_kernel(%arg0: memref<64x48xf32, #tpu.memory_space<vmem>>, %arg1: memref<48x128xf32, #tpu.memory_space<vmem>>, %arg2: memref<32x128xf32, #tpu.memory_space<vmem>>, %arg3: memref<1x128xf32, #tpu.memory_space<vmem>>, %arg4: memref<2x32x128xf32, #tpu.memory_space<vmem>>, %arg5: memref<2x32x128xf32, #tpu.memory_space<vmem>>, %arg6: memref<2x1x128xf32, #tpu.memory_space<vmem>>, %arg7: memref<32x16xf32, #tpu.memory_space<vmem>>, %arg8: memref<1x16xf32, #tpu.memory_space<vmem>>, %arg9: memref<16x8xf32, #tpu.memory_space<vmem>>, %arg10: memref<1x8xf32, #tpu.memory_space<vmem>>, %arg11: memref<8x8xf32, #tpu.memory_space<vmem>>) attributes {dimension_semantics = [], scalar_prefetch = 0 : i64, scratch_operands = 0 : i64, tpu.core_type = #tpu.core_type<tc>} {
    %c0 = arith.constant 0 : index
    %c0_0 = arith.constant 0 : index
    %0 = vector.load %arg0[%c0, %c0_0] : memref<64x48xf32, #tpu.memory_space<vmem>>, vector<64x48xf32>
    %c0_1 = arith.constant 0 : index
    %c0_2 = arith.constant 0 : index
    %1 = vector.load %arg1[%c0_1, %c0_2] : memref<48x128xf32, #tpu.memory_space<vmem>>, vector<48x128xf32>
    %cst = arith.constant dense<0.000000e+00> : vector<64x128xf32>
    %2 = tpu.matmul %0, %1, %cst {dimension_numbers = #tpu.dot_dimension_numbers<[1], [0], [0], [1], [0, 0, 1, 1], [], []>} : vector<64x48xf32>, vector<48x128xf32>, vector<64x128xf32> -> vector<64x128xf32>
    %c0_3 = arith.constant 0 : index
    %c0_4 = arith.constant 0 : index
    %3 = vector.load %arg3[%c0_3, %c0_4] : memref<1x128xf32, #tpu.memory_space<vmem>>, vector<1x128xf32>
    %4 = vector.broadcast %3 : vector<1x128xf32> to vector<64x128xf32>
    %5 = arith.addf %2, %4 : vector<64x128xf32>
    %c0_5 = arith.constant 0 : index
    %c0_6 = arith.constant 0 : index
    %6 = vector.load %arg2[%c0_5, %c0_6] : memref<32x128xf32, #tpu.memory_space<vmem>>, vector<32x128xf32>
    %c0_7 = arith.constant 0 : index
    %c0_8 = arith.constant 0 : index
    %c0_9 = arith.constant 0 : index
    %7 = vector.load %arg4[%c0_7, %c0_8, %c0_9] : memref<2x32x128xf32, #tpu.memory_space<vmem>>, vector<1x32x128xf32>
    %8 = vector.shape_cast %7 : vector<1x32x128xf32> to vector<32x128xf32>
    %c1 = arith.constant 1 : index
    %c0_10 = arith.constant 0 : index
    %c0_11 = arith.constant 0 : index
    %9 = vector.load %arg4[%c1, %c0_10, %c0_11] : memref<2x32x128xf32, #tpu.memory_space<vmem>>, vector<1x32x128xf32>
    %10 = vector.shape_cast %9 : vector<1x32x128xf32> to vector<32x128xf32>
    %c0_12 = arith.constant 0 : index
    %c0_13 = arith.constant 0 : index
    %c0_14 = arith.constant 0 : index
    %11 = vector.load %arg5[%c0_12, %c0_13, %c0_14] : memref<2x32x128xf32, #tpu.memory_space<vmem>>, vector<1x32x128xf32>
    %12 = vector.shape_cast %11 : vector<1x32x128xf32> to vector<32x128xf32>
    %c1_15 = arith.constant 1 : index
    %c0_16 = arith.constant 0 : index
    %c0_17 = arith.constant 0 : index
    %13 = vector.load %arg5[%c1_15, %c0_16, %c0_17] : memref<2x32x128xf32, #tpu.memory_space<vmem>>, vector<1x32x128xf32>
    %14 = vector.shape_cast %13 : vector<1x32x128xf32> to vector<32x128xf32>
    %c0_18 = arith.constant 0 : index
    %c0_19 = arith.constant 0 : index
    %c0_20 = arith.constant 0 : index
    %15 = vector.load %arg6[%c0_18, %c0_19, %c0_20] : memref<2x1x128xf32, #tpu.memory_space<vmem>>, vector<1x1x128xf32>
    %16 = vector.shape_cast %15 : vector<1x1x128xf32> to vector<1x128xf32>
    %c1_21 = arith.constant 1 : index
    %c0_22 = arith.constant 0 : index
    %c0_23 = arith.constant 0 : index
    %17 = vector.load %arg6[%c1_21, %c0_22, %c0_23] : memref<2x1x128xf32, #tpu.memory_space<vmem>>, vector<1x1x128xf32>
    %18 = vector.shape_cast %17 : vector<1x1x128xf32> to vector<1x128xf32>
    %cst_24 = arith.constant 0.000000e+00 : f32
    %19 = vector.broadcast %cst_24 : f32 to vector<8x32xf32>
    %20 = vector.extract_strided_slice %5 {offsets = [0, 0], sizes = [8, 128], strides = [1, 1]} : vector<64x128xf32> to vector<8x128xf32>
    %cst_25 = arith.constant dense<0.000000e+00> : vector<8x128xf32>
    %21 = tpu.matmul %19, %6, %cst_25 {dimension_numbers = #tpu.dot_dimension_numbers<[1], [0], [0], [1], [0, 0, 1, 1], [], []>} : vector<8x32xf32>, vector<32x128xf32>, vector<8x128xf32> -> vector<8x128xf32>
    %22 = arith.addf %20, %21 : vector<8x128xf32>
    %23 = arith.negf %22 : vector<8x128xf32>
    %24 = math.exp %23 : vector<8x128xf32>
    %cst_26 = arith.constant 1.000000e+00 : f32
    %25 = vector.broadcast %cst_26 : f32 to vector<8x128xf32>
    %26 = arith.addf %25, %24 : vector<8x128xf32>
    %27 = arith.divf %25, %26 : vector<8x128xf32>
    %28 = math.tanh %22 : vector<8x128xf32>
    %29 = vector.extract_strided_slice %27 {offsets = [0, 0], sizes = [8, 32], strides = [1, 1]} : vector<8x128xf32> to vector<8x32xf32>
    %30 = vector.extract_strided_slice %27 {offsets = [0, 32], sizes = [8, 32], strides = [1, 1]} : vector<8x128xf32> to vector<8x32xf32>
    %31 = vector.extract_strided_slice %28 {offsets = [0, 64], sizes = [8, 32], strides = [1, 1]} : vector<8x128xf32> to vector<8x32xf32>
    %32 = vector.extract_strided_slice %27 {offsets = [0, 96], sizes = [8, 32], strides = [1, 1]} : vector<8x128xf32> to vector<8x32xf32>
    %33 = arith.mulf %30, %19 : vector<8x32xf32>
    %34 = arith.mulf %29, %31 : vector<8x32xf32>
    %35 = arith.addf %33, %34 : vector<8x32xf32>
    %36 = math.tanh %35 : vector<8x32xf32>
    %37 = arith.mulf %32, %36 : vector<8x32xf32>
    %38 = vector.extract_strided_slice %5 {offsets = [8, 0], sizes = [8, 128], strides = [1, 1]} : vector<64x128xf32> to vector<8x128xf32>
    %cst_27 = arith.constant dense<0.000000e+00> : vector<8x128xf32>
    %39 = tpu.matmul %37, %6, %cst_27 {dimension_numbers = #tpu.dot_dimension_numbers<[1], [0], [0], [1], [0, 0, 1, 1], [], []>} : vector<8x32xf32>, vector<32x128xf32>, vector<8x128xf32> -> vector<8x128xf32>
    %40 = arith.addf %38, %39 : vector<8x128xf32>
    %41 = arith.negf %40 : vector<8x128xf32>
    %42 = math.exp %41 : vector<8x128xf32>
    %cst_28 = arith.constant 1.000000e+00 : f32
    %43 = vector.broadcast %cst_28 : f32 to vector<8x128xf32>
    %44 = arith.addf %43, %42 : vector<8x128xf32>
    %45 = arith.divf %43, %44 : vector<8x128xf32>
    %46 = math.tanh %40 : vector<8x128xf32>
    %47 = vector.extract_strided_slice %45 {offsets = [0, 0], sizes = [8, 32], strides = [1, 1]} : vector<8x128xf32> to vector<8x32xf32>
    %48 = vector.extract_strided_slice %45 {offsets = [0, 32], sizes = [8, 32], strides = [1, 1]} : vector<8x128xf32> to vector<8x32xf32>
    %49 = vector.extract_strided_slice %46 {offsets = [0, 64], sizes = [8, 32], strides = [1, 1]} : vector<8x128xf32> to vector<8x32xf32>
    %50 = vector.extract_strided_slice %45 {offsets = [0, 96], sizes = [8, 32], strides = [1, 1]} : vector<8x128xf32> to vector<8x32xf32>
    %51 = arith.mulf %48, %35 : vector<8x32xf32>
    %52 = arith.mulf %47, %49 : vector<8x32xf32>
    %53 = arith.addf %51, %52 : vector<8x32xf32>
    %54 = math.tanh %53 : vector<8x32xf32>
    %55 = arith.mulf %50, %54 : vector<8x32xf32>
    %cst_29 = arith.constant dense<0.000000e+00> : vector<8x128xf32>
    %56 = tpu.matmul %37, %8, %cst_29 {dimension_numbers = #tpu.dot_dimension_numbers<[1], [0], [0], [1], [0, 0, 1, 1], [], []>} : vector<8x32xf32>, vector<32x128xf32>, vector<8x128xf32> -> vector<8x128xf32>
    %cst_30 = arith.constant dense<0.000000e+00> : vector<8x128xf32>
    %57 = tpu.matmul %19, %12, %cst_30 {dimension_numbers = #tpu.dot_dimension_numbers<[1], [0], [0], [1], [0, 0, 1, 1], [], []>} : vector<8x32xf32>, vector<32x128xf32>, vector<8x128xf32> -> vector<8x128xf32>
    %58 = arith.addf %56, %57 : vector<8x128xf32>
    %59 = vector.broadcast %16 : vector<1x128xf32> to vector<8x128xf32>
    %60 = arith.addf %58, %59 : vector<8x128xf32>
    %61 = arith.negf %60 : vector<8x128xf32>
    %62 = math.exp %61 : vector<8x128xf32>
    %cst_31 = arith.constant 1.000000e+00 : f32
    %63 = vector.broadcast %cst_31 : f32 to vector<8x128xf32>
    %64 = arith.addf %63, %62 : vector<8x128xf32>
    %65 = arith.divf %63, %64 : vector<8x128xf32>
    %66 = math.tanh %60 : vector<8x128xf32>
    %67 = vector.extract_strided_slice %65 {offsets = [0, 0], sizes = [8, 32], strides = [1, 1]} : vector<8x128xf32> to vector<8x32xf32>
    %68 = vector.extract_strided_slice %65 {offsets = [0, 32], sizes = [8, 32], strides = [1, 1]} : vector<8x128xf32> to vector<8x32xf32>
    %69 = vector.extract_strided_slice %66 {offsets = [0, 64], sizes = [8, 32], strides = [1, 1]} : vector<8x128xf32> to vector<8x32xf32>
    %70 = vector.extract_strided_slice %65 {offsets = [0, 96], sizes = [8, 32], strides = [1, 1]} : vector<8x128xf32> to vector<8x32xf32>
    %71 = arith.mulf %68, %19 : vector<8x32xf32>
    %72 = arith.mulf %67, %69 : vector<8x32xf32>
    %73 = arith.addf %71, %72 : vector<8x32xf32>
    %74 = math.tanh %73 : vector<8x32xf32>
    %75 = arith.mulf %70, %74 : vector<8x32xf32>
    %76 = vector.extract_strided_slice %5 {offsets = [16, 0], sizes = [8, 128], strides = [1, 1]} : vector<64x128xf32> to vector<8x128xf32>
    %cst_32 = arith.constant dense<0.000000e+00> : vector<8x128xf32>
    %77 = tpu.matmul %55, %6, %cst_32 {dimension_numbers = #tpu.dot_dimension_numbers<[1], [0], [0], [1], [0, 0, 1, 1], [], []>} : vector<8x32xf32>, vector<32x128xf32>, vector<8x128xf32> -> vector<8x128xf32>
    %78 = arith.addf %76, %77 : vector<8x128xf32>
    %79 = arith.negf %78 : vector<8x128xf32>
    %80 = math.exp %79 : vector<8x128xf32>
    %cst_33 = arith.constant 1.000000e+00 : f32
    %81 = vector.broadcast %cst_33 : f32 to vector<8x128xf32>
    %82 = arith.addf %81, %80 : vector<8x128xf32>
    %83 = arith.divf %81, %82 : vector<8x128xf32>
    %84 = math.tanh %78 : vector<8x128xf32>
    %85 = vector.extract_strided_slice %83 {offsets = [0, 0], sizes = [8, 32], strides = [1, 1]} : vector<8x128xf32> to vector<8x32xf32>
    %86 = vector.extract_strided_slice %83 {offsets = [0, 32], sizes = [8, 32], strides = [1, 1]} : vector<8x128xf32> to vector<8x32xf32>
    %87 = vector.extract_strided_slice %84 {offsets = [0, 64], sizes = [8, 32], strides = [1, 1]} : vector<8x128xf32> to vector<8x32xf32>
    %88 = vector.extract_strided_slice %83 {offsets = [0, 96], sizes = [8, 32], strides = [1, 1]} : vector<8x128xf32> to vector<8x32xf32>
    %89 = arith.mulf %86, %53 : vector<8x32xf32>
    %90 = arith.mulf %85, %87 : vector<8x32xf32>
    %91 = arith.addf %89, %90 : vector<8x32xf32>
    %92 = math.tanh %91 : vector<8x32xf32>
    %93 = arith.mulf %88, %92 : vector<8x32xf32>
    %cst_34 = arith.constant dense<0.000000e+00> : vector<8x128xf32>
    %94 = tpu.matmul %55, %8, %cst_34 {dimension_numbers = #tpu.dot_dimension_numbers<[1], [0], [0], [1], [0, 0, 1, 1], [], []>} : vector<8x32xf32>, vector<32x128xf32>, vector<8x128xf32> -> vector<8x128xf32>
    %cst_35 = arith.constant dense<0.000000e+00> : vector<8x128xf32>
    %95 = tpu.matmul %75, %12, %cst_35 {dimension_numbers = #tpu.dot_dimension_numbers<[1], [0], [0], [1], [0, 0, 1, 1], [], []>} : vector<8x32xf32>, vector<32x128xf32>, vector<8x128xf32> -> vector<8x128xf32>
    %96 = arith.addf %94, %95 : vector<8x128xf32>
    %97 = vector.broadcast %16 : vector<1x128xf32> to vector<8x128xf32>
    %98 = arith.addf %96, %97 : vector<8x128xf32>
    %99 = arith.negf %98 : vector<8x128xf32>
    %100 = math.exp %99 : vector<8x128xf32>
    %cst_36 = arith.constant 1.000000e+00 : f32
    %101 = vector.broadcast %cst_36 : f32 to vector<8x128xf32>
    %102 = arith.addf %101, %100 : vector<8x128xf32>
    %103 = arith.divf %101, %102 : vector<8x128xf32>
    %104 = math.tanh %98 : vector<8x128xf32>
    %105 = vector.extract_strided_slice %103 {offsets = [0, 0], sizes = [8, 32], strides = [1, 1]} : vector<8x128xf32> to vector<8x32xf32>
    %106 = vector.extract_strided_slice %103 {offsets = [0, 32], sizes = [8, 32], strides = [1, 1]} : vector<8x128xf32> to vector<8x32xf32>
    %107 = vector.extract_strided_slice %104 {offsets = [0, 64], sizes = [8, 32], strides = [1, 1]} : vector<8x128xf32> to vector<8x32xf32>
    %108 = vector.extract_strided_slice %103 {offsets = [0, 96], sizes = [8, 32], strides = [1, 1]} : vector<8x128xf32> to vector<8x32xf32>
    %109 = arith.mulf %106, %73 : vector<8x32xf32>
    %110 = arith.mulf %105, %107 : vector<8x32xf32>
    %111 = arith.addf %109, %110 : vector<8x32xf32>
    %112 = math.tanh %111 : vector<8x32xf32>
    %113 = arith.mulf %108, %112 : vector<8x32xf32>
    %cst_37 = arith.constant dense<0.000000e+00> : vector<8x128xf32>
    %114 = tpu.matmul %75, %10, %cst_37 {dimension_numbers = #tpu.dot_dimension_numbers<[1], [0], [0], [1], [0, 0, 1, 1], [], []>} : vector<8x32xf32>, vector<32x128xf32>, vector<8x128xf32> -> vector<8x128xf32>
    %cst_38 = arith.constant dense<0.000000e+00> : vector<8x128xf32>
    %115 = tpu.matmul %19, %14, %cst_38 {dimension_numbers = #tpu.dot_dimension_numbers<[1], [0], [0], [1], [0, 0, 1, 1], [], []>} : vector<8x32xf32>, vector<32x128xf32>, vector<8x128xf32> -> vector<8x128xf32>
    %116 = arith.addf %114, %115 : vector<8x128xf32>
    %117 = vector.broadcast %18 : vector<1x128xf32> to vector<8x128xf32>
    %118 = arith.addf %116, %117 : vector<8x128xf32>
    %119 = arith.negf %118 : vector<8x128xf32>
    %120 = math.exp %119 : vector<8x128xf32>
    %cst_39 = arith.constant 1.000000e+00 : f32
    %121 = vector.broadcast %cst_39 : f32 to vector<8x128xf32>
    %122 = arith.addf %121, %120 : vector<8x128xf32>
    %123 = arith.divf %121, %122 : vector<8x128xf32>
    %124 = math.tanh %118 : vector<8x128xf32>
    %125 = vector.extract_strided_slice %123 {offsets = [0, 0], sizes = [8, 32], strides = [1, 1]} : vector<8x128xf32> to vector<8x32xf32>
    %126 = vector.extract_strided_slice %123 {offsets = [0, 32], sizes = [8, 32], strides = [1, 1]} : vector<8x128xf32> to vector<8x32xf32>
    %127 = vector.extract_strided_slice %124 {offsets = [0, 64], sizes = [8, 32], strides = [1, 1]} : vector<8x128xf32> to vector<8x32xf32>
    %128 = vector.extract_strided_slice %123 {offsets = [0, 96], sizes = [8, 32], strides = [1, 1]} : vector<8x128xf32> to vector<8x32xf32>
    %129 = arith.mulf %126, %19 : vector<8x32xf32>
    %130 = arith.mulf %125, %127 : vector<8x32xf32>
    %131 = arith.addf %129, %130 : vector<8x32xf32>
    %132 = math.tanh %131 : vector<8x32xf32>
    %133 = arith.mulf %128, %132 : vector<8x32xf32>
    %134 = vector.extract_strided_slice %5 {offsets = [24, 0], sizes = [8, 128], strides = [1, 1]} : vector<64x128xf32> to vector<8x128xf32>
    %cst_40 = arith.constant dense<0.000000e+00> : vector<8x128xf32>
    %135 = tpu.matmul %93, %6, %cst_40 {dimension_numbers = #tpu.dot_dimension_numbers<[1], [0], [0], [1], [0, 0, 1, 1], [], []>} : vector<8x32xf32>, vector<32x128xf32>, vector<8x128xf32> -> vector<8x128xf32>
    %136 = arith.addf %134, %135 : vector<8x128xf32>
    %137 = arith.negf %136 : vector<8x128xf32>
    %138 = math.exp %137 : vector<8x128xf32>
    %cst_41 = arith.constant 1.000000e+00 : f32
    %139 = vector.broadcast %cst_41 : f32 to vector<8x128xf32>
    %140 = arith.addf %139, %138 : vector<8x128xf32>
    %141 = arith.divf %139, %140 : vector<8x128xf32>
    %142 = math.tanh %136 : vector<8x128xf32>
    %143 = vector.extract_strided_slice %141 {offsets = [0, 0], sizes = [8, 32], strides = [1, 1]} : vector<8x128xf32> to vector<8x32xf32>
    %144 = vector.extract_strided_slice %141 {offsets = [0, 32], sizes = [8, 32], strides = [1, 1]} : vector<8x128xf32> to vector<8x32xf32>
    %145 = vector.extract_strided_slice %142 {offsets = [0, 64], sizes = [8, 32], strides = [1, 1]} : vector<8x128xf32> to vector<8x32xf32>
    %146 = vector.extract_strided_slice %141 {offsets = [0, 96], sizes = [8, 32], strides = [1, 1]} : vector<8x128xf32> to vector<8x32xf32>
    %147 = arith.mulf %144, %91 : vector<8x32xf32>
    %148 = arith.mulf %143, %145 : vector<8x32xf32>
    %149 = arith.addf %147, %148 : vector<8x32xf32>
    %150 = math.tanh %149 : vector<8x32xf32>
    %151 = arith.mulf %146, %150 : vector<8x32xf32>
    %cst_42 = arith.constant dense<0.000000e+00> : vector<8x128xf32>
    %152 = tpu.matmul %93, %8, %cst_42 {dimension_numbers = #tpu.dot_dimension_numbers<[1], [0], [0], [1], [0, 0, 1, 1], [], []>} : vector<8x32xf32>, vector<32x128xf32>, vector<8x128xf32> -> vector<8x128xf32>
    %cst_43 = arith.constant dense<0.000000e+00> : vector<8x128xf32>
    %153 = tpu.matmul %113, %12, %cst_43 {dimension_numbers = #tpu.dot_dimension_numbers<[1], [0], [0], [1], [0, 0, 1, 1], [], []>} : vector<8x32xf32>, vector<32x128xf32>, vector<8x128xf32> -> vector<8x128xf32>
    %154 = arith.addf %152, %153 : vector<8x128xf32>
    %155 = vector.broadcast %16 : vector<1x128xf32> to vector<8x128xf32>
    %156 = arith.addf %154, %155 : vector<8x128xf32>
    %157 = arith.negf %156 : vector<8x128xf32>
    %158 = math.exp %157 : vector<8x128xf32>
    %cst_44 = arith.constant 1.000000e+00 : f32
    %159 = vector.broadcast %cst_44 : f32 to vector<8x128xf32>
    %160 = arith.addf %159, %158 : vector<8x128xf32>
    %161 = arith.divf %159, %160 : vector<8x128xf32>
    %162 = math.tanh %156 : vector<8x128xf32>
    %163 = vector.extract_strided_slice %161 {offsets = [0, 0], sizes = [8, 32], strides = [1, 1]} : vector<8x128xf32> to vector<8x32xf32>
    %164 = vector.extract_strided_slice %161 {offsets = [0, 32], sizes = [8, 32], strides = [1, 1]} : vector<8x128xf32> to vector<8x32xf32>
    %165 = vector.extract_strided_slice %162 {offsets = [0, 64], sizes = [8, 32], strides = [1, 1]} : vector<8x128xf32> to vector<8x32xf32>
    %166 = vector.extract_strided_slice %161 {offsets = [0, 96], sizes = [8, 32], strides = [1, 1]} : vector<8x128xf32> to vector<8x32xf32>
    %167 = arith.mulf %164, %111 : vector<8x32xf32>
    %168 = arith.mulf %163, %165 : vector<8x32xf32>
    %169 = arith.addf %167, %168 : vector<8x32xf32>
    %170 = math.tanh %169 : vector<8x32xf32>
    %171 = arith.mulf %166, %170 : vector<8x32xf32>
    %cst_45 = arith.constant dense<0.000000e+00> : vector<8x128xf32>
    %172 = tpu.matmul %113, %10, %cst_45 {dimension_numbers = #tpu.dot_dimension_numbers<[1], [0], [0], [1], [0, 0, 1, 1], [], []>} : vector<8x32xf32>, vector<32x128xf32>, vector<8x128xf32> -> vector<8x128xf32>
    %cst_46 = arith.constant dense<0.000000e+00> : vector<8x128xf32>
    %173 = tpu.matmul %133, %14, %cst_46 {dimension_numbers = #tpu.dot_dimension_numbers<[1], [0], [0], [1], [0, 0, 1, 1], [], []>} : vector<8x32xf32>, vector<32x128xf32>, vector<8x128xf32> -> vector<8x128xf32>
    %174 = arith.addf %172, %173 : vector<8x128xf32>
    %175 = vector.broadcast %18 : vector<1x128xf32> to vector<8x128xf32>
    %176 = arith.addf %174, %175 : vector<8x128xf32>
    %177 = arith.negf %176 : vector<8x128xf32>
    %178 = math.exp %177 : vector<8x128xf32>
    %cst_47 = arith.constant 1.000000e+00 : f32
    %179 = vector.broadcast %cst_47 : f32 to vector<8x128xf32>
    %180 = arith.addf %179, %178 : vector<8x128xf32>
    %181 = arith.divf %179, %180 : vector<8x128xf32>
    %182 = math.tanh %176 : vector<8x128xf32>
    %183 = vector.extract_strided_slice %181 {offsets = [0, 0], sizes = [8, 32], strides = [1, 1]} : vector<8x128xf32> to vector<8x32xf32>
    %184 = vector.extract_strided_slice %181 {offsets = [0, 32], sizes = [8, 32], strides = [1, 1]} : vector<8x128xf32> to vector<8x32xf32>
    %185 = vector.extract_strided_slice %182 {offsets = [0, 64], sizes = [8, 32], strides = [1, 1]} : vector<8x128xf32> to vector<8x32xf32>
    %186 = vector.extract_strided_slice %181 {offsets = [0, 96], sizes = [8, 32], strides = [1, 1]} : vector<8x128xf32> to vector<8x32xf32>
    %187 = arith.mulf %184, %131 : vector<8x32xf32>
    %188 = arith.mulf %183, %185 : vector<8x32xf32>
    %189 = arith.addf %187, %188 : vector<8x32xf32>
    %190 = math.tanh %189 : vector<8x32xf32>
    %191 = arith.mulf %186, %190 : vector<8x32xf32>
    %192 = vector.extract_strided_slice %5 {offsets = [32, 0], sizes = [8, 128], strides = [1, 1]} : vector<64x128xf32> to vector<8x128xf32>
    %cst_48 = arith.constant dense<0.000000e+00> : vector<8x128xf32>
    %193 = tpu.matmul %151, %6, %cst_48 {dimension_numbers = #tpu.dot_dimension_numbers<[1], [0], [0], [1], [0, 0, 1, 1], [], []>} : vector<8x32xf32>, vector<32x128xf32>, vector<8x128xf32> -> vector<8x128xf32>
    %194 = arith.addf %192, %193 : vector<8x128xf32>
    %195 = arith.negf %194 : vector<8x128xf32>
    %196 = math.exp %195 : vector<8x128xf32>
    %cst_49 = arith.constant 1.000000e+00 : f32
    %197 = vector.broadcast %cst_49 : f32 to vector<8x128xf32>
    %198 = arith.addf %197, %196 : vector<8x128xf32>
    %199 = arith.divf %197, %198 : vector<8x128xf32>
    %200 = math.tanh %194 : vector<8x128xf32>
    %201 = vector.extract_strided_slice %199 {offsets = [0, 0], sizes = [8, 32], strides = [1, 1]} : vector<8x128xf32> to vector<8x32xf32>
    %202 = vector.extract_strided_slice %199 {offsets = [0, 32], sizes = [8, 32], strides = [1, 1]} : vector<8x128xf32> to vector<8x32xf32>
    %203 = vector.extract_strided_slice %200 {offsets = [0, 64], sizes = [8, 32], strides = [1, 1]} : vector<8x128xf32> to vector<8x32xf32>
    %204 = vector.extract_strided_slice %199 {offsets = [0, 96], sizes = [8, 32], strides = [1, 1]} : vector<8x128xf32> to vector<8x32xf32>
    %205 = arith.mulf %202, %149 : vector<8x32xf32>
    %206 = arith.mulf %201, %203 : vector<8x32xf32>
    %207 = arith.addf %205, %206 : vector<8x32xf32>
    %208 = math.tanh %207 : vector<8x32xf32>
    %209 = arith.mulf %204, %208 : vector<8x32xf32>
    %cst_50 = arith.constant dense<0.000000e+00> : vector<8x128xf32>
    %210 = tpu.matmul %151, %8, %cst_50 {dimension_numbers = #tpu.dot_dimension_numbers<[1], [0], [0], [1], [0, 0, 1, 1], [], []>} : vector<8x32xf32>, vector<32x128xf32>, vector<8x128xf32> -> vector<8x128xf32>
    %cst_51 = arith.constant dense<0.000000e+00> : vector<8x128xf32>
    %211 = tpu.matmul %171, %12, %cst_51 {dimension_numbers = #tpu.dot_dimension_numbers<[1], [0], [0], [1], [0, 0, 1, 1], [], []>} : vector<8x32xf32>, vector<32x128xf32>, vector<8x128xf32> -> vector<8x128xf32>
    %212 = arith.addf %210, %211 : vector<8x128xf32>
    %213 = vector.broadcast %16 : vector<1x128xf32> to vector<8x128xf32>
    %214 = arith.addf %212, %213 : vector<8x128xf32>
    %215 = arith.negf %214 : vector<8x128xf32>
    %216 = math.exp %215 : vector<8x128xf32>
    %cst_52 = arith.constant 1.000000e+00 : f32
    %217 = vector.broadcast %cst_52 : f32 to vector<8x128xf32>
    %218 = arith.addf %217, %216 : vector<8x128xf32>
    %219 = arith.divf %217, %218 : vector<8x128xf32>
    %220 = math.tanh %214 : vector<8x128xf32>
    %221 = vector.extract_strided_slice %219 {offsets = [0, 0], sizes = [8, 32], strides = [1, 1]} : vector<8x128xf32> to vector<8x32xf32>
    %222 = vector.extract_strided_slice %219 {offsets = [0, 32], sizes = [8, 32], strides = [1, 1]} : vector<8x128xf32> to vector<8x32xf32>
    %223 = vector.extract_strided_slice %220 {offsets = [0, 64], sizes = [8, 32], strides = [1, 1]} : vector<8x128xf32> to vector<8x32xf32>
    %224 = vector.extract_strided_slice %219 {offsets = [0, 96], sizes = [8, 32], strides = [1, 1]} : vector<8x128xf32> to vector<8x32xf32>
    %225 = arith.mulf %222, %169 : vector<8x32xf32>
    %226 = arith.mulf %221, %223 : vector<8x32xf32>
    %227 = arith.addf %225, %226 : vector<8x32xf32>
    %228 = math.tanh %227 : vector<8x32xf32>
    %229 = arith.mulf %224, %228 : vector<8x32xf32>
    %cst_53 = arith.constant dense<0.000000e+00> : vector<8x128xf32>
    %230 = tpu.matmul %171, %10, %cst_53 {dimension_numbers = #tpu.dot_dimension_numbers<[1], [0], [0], [1], [0, 0, 1, 1], [], []>} : vector<8x32xf32>, vector<32x128xf32>, vector<8x128xf32> -> vector<8x128xf32>
    %cst_54 = arith.constant dense<0.000000e+00> : vector<8x128xf32>
    %231 = tpu.matmul %191, %14, %cst_54 {dimension_numbers = #tpu.dot_dimension_numbers<[1], [0], [0], [1], [0, 0, 1, 1], [], []>} : vector<8x32xf32>, vector<32x128xf32>, vector<8x128xf32> -> vector<8x128xf32>
    %232 = arith.addf %230, %231 : vector<8x128xf32>
    %233 = vector.broadcast %18 : vector<1x128xf32> to vector<8x128xf32>
    %234 = arith.addf %232, %233 : vector<8x128xf32>
    %235 = arith.negf %234 : vector<8x128xf32>
    %236 = math.exp %235 : vector<8x128xf32>
    %cst_55 = arith.constant 1.000000e+00 : f32
    %237 = vector.broadcast %cst_55 : f32 to vector<8x128xf32>
    %238 = arith.addf %237, %236 : vector<8x128xf32>
    %239 = arith.divf %237, %238 : vector<8x128xf32>
    %240 = math.tanh %234 : vector<8x128xf32>
    %241 = vector.extract_strided_slice %239 {offsets = [0, 0], sizes = [8, 32], strides = [1, 1]} : vector<8x128xf32> to vector<8x32xf32>
    %242 = vector.extract_strided_slice %239 {offsets = [0, 32], sizes = [8, 32], strides = [1, 1]} : vector<8x128xf32> to vector<8x32xf32>
    %243 = vector.extract_strided_slice %240 {offsets = [0, 64], sizes = [8, 32], strides = [1, 1]} : vector<8x128xf32> to vector<8x32xf32>
    %244 = vector.extract_strided_slice %239 {offsets = [0, 96], sizes = [8, 32], strides = [1, 1]} : vector<8x128xf32> to vector<8x32xf32>
    %245 = arith.mulf %242, %189 : vector<8x32xf32>
    %246 = arith.mulf %241, %243 : vector<8x32xf32>
    %247 = arith.addf %245, %246 : vector<8x32xf32>
    %248 = math.tanh %247 : vector<8x32xf32>
    %249 = arith.mulf %244, %248 : vector<8x32xf32>
    %250 = vector.extract_strided_slice %5 {offsets = [40, 0], sizes = [8, 128], strides = [1, 1]} : vector<64x128xf32> to vector<8x128xf32>
    %cst_56 = arith.constant dense<0.000000e+00> : vector<8x128xf32>
    %251 = tpu.matmul %209, %6, %cst_56 {dimension_numbers = #tpu.dot_dimension_numbers<[1], [0], [0], [1], [0, 0, 1, 1], [], []>} : vector<8x32xf32>, vector<32x128xf32>, vector<8x128xf32> -> vector<8x128xf32>
    %252 = arith.addf %250, %251 : vector<8x128xf32>
    %253 = arith.negf %252 : vector<8x128xf32>
    %254 = math.exp %253 : vector<8x128xf32>
    %cst_57 = arith.constant 1.000000e+00 : f32
    %255 = vector.broadcast %cst_57 : f32 to vector<8x128xf32>
    %256 = arith.addf %255, %254 : vector<8x128xf32>
    %257 = arith.divf %255, %256 : vector<8x128xf32>
    %258 = math.tanh %252 : vector<8x128xf32>
    %259 = vector.extract_strided_slice %257 {offsets = [0, 0], sizes = [8, 32], strides = [1, 1]} : vector<8x128xf32> to vector<8x32xf32>
    %260 = vector.extract_strided_slice %257 {offsets = [0, 32], sizes = [8, 32], strides = [1, 1]} : vector<8x128xf32> to vector<8x32xf32>
    %261 = vector.extract_strided_slice %258 {offsets = [0, 64], sizes = [8, 32], strides = [1, 1]} : vector<8x128xf32> to vector<8x32xf32>
    %262 = vector.extract_strided_slice %257 {offsets = [0, 96], sizes = [8, 32], strides = [1, 1]} : vector<8x128xf32> to vector<8x32xf32>
    %263 = arith.mulf %260, %207 : vector<8x32xf32>
    %264 = arith.mulf %259, %261 : vector<8x32xf32>
    %265 = arith.addf %263, %264 : vector<8x32xf32>
    %266 = math.tanh %265 : vector<8x32xf32>
    %267 = arith.mulf %262, %266 : vector<8x32xf32>
    %cst_58 = arith.constant dense<0.000000e+00> : vector<8x128xf32>
    %268 = tpu.matmul %209, %8, %cst_58 {dimension_numbers = #tpu.dot_dimension_numbers<[1], [0], [0], [1], [0, 0, 1, 1], [], []>} : vector<8x32xf32>, vector<32x128xf32>, vector<8x128xf32> -> vector<8x128xf32>
    %cst_59 = arith.constant dense<0.000000e+00> : vector<8x128xf32>
    %269 = tpu.matmul %229, %12, %cst_59 {dimension_numbers = #tpu.dot_dimension_numbers<[1], [0], [0], [1], [0, 0, 1, 1], [], []>} : vector<8x32xf32>, vector<32x128xf32>, vector<8x128xf32> -> vector<8x128xf32>
    %270 = arith.addf %268, %269 : vector<8x128xf32>
    %271 = vector.broadcast %16 : vector<1x128xf32> to vector<8x128xf32>
    %272 = arith.addf %270, %271 : vector<8x128xf32>
    %273 = arith.negf %272 : vector<8x128xf32>
    %274 = math.exp %273 : vector<8x128xf32>
    %cst_60 = arith.constant 1.000000e+00 : f32
    %275 = vector.broadcast %cst_60 : f32 to vector<8x128xf32>
    %276 = arith.addf %275, %274 : vector<8x128xf32>
    %277 = arith.divf %275, %276 : vector<8x128xf32>
    %278 = math.tanh %272 : vector<8x128xf32>
    %279 = vector.extract_strided_slice %277 {offsets = [0, 0], sizes = [8, 32], strides = [1, 1]} : vector<8x128xf32> to vector<8x32xf32>
    %280 = vector.extract_strided_slice %277 {offsets = [0, 32], sizes = [8, 32], strides = [1, 1]} : vector<8x128xf32> to vector<8x32xf32>
    %281 = vector.extract_strided_slice %278 {offsets = [0, 64], sizes = [8, 32], strides = [1, 1]} : vector<8x128xf32> to vector<8x32xf32>
    %282 = vector.extract_strided_slice %277 {offsets = [0, 96], sizes = [8, 32], strides = [1, 1]} : vector<8x128xf32> to vector<8x32xf32>
    %283 = arith.mulf %280, %227 : vector<8x32xf32>
    %284 = arith.mulf %279, %281 : vector<8x32xf32>
    %285 = arith.addf %283, %284 : vector<8x32xf32>
    %286 = math.tanh %285 : vector<8x32xf32>
    %287 = arith.mulf %282, %286 : vector<8x32xf32>
    %cst_61 = arith.constant dense<0.000000e+00> : vector<8x128xf32>
    %288 = tpu.matmul %229, %10, %cst_61 {dimension_numbers = #tpu.dot_dimension_numbers<[1], [0], [0], [1], [0, 0, 1, 1], [], []>} : vector<8x32xf32>, vector<32x128xf32>, vector<8x128xf32> -> vector<8x128xf32>
    %cst_62 = arith.constant dense<0.000000e+00> : vector<8x128xf32>
    %289 = tpu.matmul %249, %14, %cst_62 {dimension_numbers = #tpu.dot_dimension_numbers<[1], [0], [0], [1], [0, 0, 1, 1], [], []>} : vector<8x32xf32>, vector<32x128xf32>, vector<8x128xf32> -> vector<8x128xf32>
    %290 = arith.addf %288, %289 : vector<8x128xf32>
    %291 = vector.broadcast %18 : vector<1x128xf32> to vector<8x128xf32>
    %292 = arith.addf %290, %291 : vector<8x128xf32>
    %293 = arith.negf %292 : vector<8x128xf32>
    %294 = math.exp %293 : vector<8x128xf32>
    %cst_63 = arith.constant 1.000000e+00 : f32
    %295 = vector.broadcast %cst_63 : f32 to vector<8x128xf32>
    %296 = arith.addf %295, %294 : vector<8x128xf32>
    %297 = arith.divf %295, %296 : vector<8x128xf32>
    %298 = math.tanh %292 : vector<8x128xf32>
    %299 = vector.extract_strided_slice %297 {offsets = [0, 0], sizes = [8, 32], strides = [1, 1]} : vector<8x128xf32> to vector<8x32xf32>
    %300 = vector.extract_strided_slice %297 {offsets = [0, 32], sizes = [8, 32], strides = [1, 1]} : vector<8x128xf32> to vector<8x32xf32>
    %301 = vector.extract_strided_slice %298 {offsets = [0, 64], sizes = [8, 32], strides = [1, 1]} : vector<8x128xf32> to vector<8x32xf32>
    %302 = vector.extract_strided_slice %297 {offsets = [0, 96], sizes = [8, 32], strides = [1, 1]} : vector<8x128xf32> to vector<8x32xf32>
    %303 = arith.mulf %300, %247 : vector<8x32xf32>
    %304 = arith.mulf %299, %301 : vector<8x32xf32>
    %305 = arith.addf %303, %304 : vector<8x32xf32>
    %306 = math.tanh %305 : vector<8x32xf32>
    %307 = arith.mulf %302, %306 : vector<8x32xf32>
    %308 = vector.extract_strided_slice %5 {offsets = [48, 0], sizes = [8, 128], strides = [1, 1]} : vector<64x128xf32> to vector<8x128xf32>
    %cst_64 = arith.constant dense<0.000000e+00> : vector<8x128xf32>
    %309 = tpu.matmul %267, %6, %cst_64 {dimension_numbers = #tpu.dot_dimension_numbers<[1], [0], [0], [1], [0, 0, 1, 1], [], []>} : vector<8x32xf32>, vector<32x128xf32>, vector<8x128xf32> -> vector<8x128xf32>
    %310 = arith.addf %308, %309 : vector<8x128xf32>
    %311 = arith.negf %310 : vector<8x128xf32>
    %312 = math.exp %311 : vector<8x128xf32>
    %cst_65 = arith.constant 1.000000e+00 : f32
    %313 = vector.broadcast %cst_65 : f32 to vector<8x128xf32>
    %314 = arith.addf %313, %312 : vector<8x128xf32>
    %315 = arith.divf %313, %314 : vector<8x128xf32>
    %316 = math.tanh %310 : vector<8x128xf32>
    %317 = vector.extract_strided_slice %315 {offsets = [0, 0], sizes = [8, 32], strides = [1, 1]} : vector<8x128xf32> to vector<8x32xf32>
    %318 = vector.extract_strided_slice %315 {offsets = [0, 32], sizes = [8, 32], strides = [1, 1]} : vector<8x128xf32> to vector<8x32xf32>
    %319 = vector.extract_strided_slice %316 {offsets = [0, 64], sizes = [8, 32], strides = [1, 1]} : vector<8x128xf32> to vector<8x32xf32>
    %320 = vector.extract_strided_slice %315 {offsets = [0, 96], sizes = [8, 32], strides = [1, 1]} : vector<8x128xf32> to vector<8x32xf32>
    %321 = arith.mulf %318, %265 : vector<8x32xf32>
    %322 = arith.mulf %317, %319 : vector<8x32xf32>
    %323 = arith.addf %321, %322 : vector<8x32xf32>
    %324 = math.tanh %323 : vector<8x32xf32>
    %325 = arith.mulf %320, %324 : vector<8x32xf32>
    %cst_66 = arith.constant dense<0.000000e+00> : vector<8x128xf32>
    %326 = tpu.matmul %267, %8, %cst_66 {dimension_numbers = #tpu.dot_dimension_numbers<[1], [0], [0], [1], [0, 0, 1, 1], [], []>} : vector<8x32xf32>, vector<32x128xf32>, vector<8x128xf32> -> vector<8x128xf32>
    %cst_67 = arith.constant dense<0.000000e+00> : vector<8x128xf32>
    %327 = tpu.matmul %287, %12, %cst_67 {dimension_numbers = #tpu.dot_dimension_numbers<[1], [0], [0], [1], [0, 0, 1, 1], [], []>} : vector<8x32xf32>, vector<32x128xf32>, vector<8x128xf32> -> vector<8x128xf32>
    %328 = arith.addf %326, %327 : vector<8x128xf32>
    %329 = vector.broadcast %16 : vector<1x128xf32> to vector<8x128xf32>
    %330 = arith.addf %328, %329 : vector<8x128xf32>
    %331 = arith.negf %330 : vector<8x128xf32>
    %332 = math.exp %331 : vector<8x128xf32>
    %cst_68 = arith.constant 1.000000e+00 : f32
    %333 = vector.broadcast %cst_68 : f32 to vector<8x128xf32>
    %334 = arith.addf %333, %332 : vector<8x128xf32>
    %335 = arith.divf %333, %334 : vector<8x128xf32>
    %336 = math.tanh %330 : vector<8x128xf32>
    %337 = vector.extract_strided_slice %335 {offsets = [0, 0], sizes = [8, 32], strides = [1, 1]} : vector<8x128xf32> to vector<8x32xf32>
    %338 = vector.extract_strided_slice %335 {offsets = [0, 32], sizes = [8, 32], strides = [1, 1]} : vector<8x128xf32> to vector<8x32xf32>
    %339 = vector.extract_strided_slice %336 {offsets = [0, 64], sizes = [8, 32], strides = [1, 1]} : vector<8x128xf32> to vector<8x32xf32>
    %340 = vector.extract_strided_slice %335 {offsets = [0, 96], sizes = [8, 32], strides = [1, 1]} : vector<8x128xf32> to vector<8x32xf32>
    %341 = arith.mulf %338, %285 : vector<8x32xf32>
    %342 = arith.mulf %337, %339 : vector<8x32xf32>
    %343 = arith.addf %341, %342 : vector<8x32xf32>
    %344 = math.tanh %343 : vector<8x32xf32>
    %345 = arith.mulf %340, %344 : vector<8x32xf32>
    %cst_69 = arith.constant dense<0.000000e+00> : vector<8x128xf32>
    %346 = tpu.matmul %287, %10, %cst_69 {dimension_numbers = #tpu.dot_dimension_numbers<[1], [0], [0], [1], [0, 0, 1, 1], [], []>} : vector<8x32xf32>, vector<32x128xf32>, vector<8x128xf32> -> vector<8x128xf32>
    %cst_70 = arith.constant dense<0.000000e+00> : vector<8x128xf32>
    %347 = tpu.matmul %307, %14, %cst_70 {dimension_numbers = #tpu.dot_dimension_numbers<[1], [0], [0], [1], [0, 0, 1, 1], [], []>} : vector<8x32xf32>, vector<32x128xf32>, vector<8x128xf32> -> vector<8x128xf32>
    %348 = arith.addf %346, %347 : vector<8x128xf32>
    %349 = vector.broadcast %18 : vector<1x128xf32> to vector<8x128xf32>
    %350 = arith.addf %348, %349 : vector<8x128xf32>
    %351 = arith.negf %350 : vector<8x128xf32>
    %352 = math.exp %351 : vector<8x128xf32>
    %cst_71 = arith.constant 1.000000e+00 : f32
    %353 = vector.broadcast %cst_71 : f32 to vector<8x128xf32>
    %354 = arith.addf %353, %352 : vector<8x128xf32>
    %355 = arith.divf %353, %354 : vector<8x128xf32>
    %356 = math.tanh %350 : vector<8x128xf32>
    %357 = vector.extract_strided_slice %355 {offsets = [0, 0], sizes = [8, 32], strides = [1, 1]} : vector<8x128xf32> to vector<8x32xf32>
    %358 = vector.extract_strided_slice %355 {offsets = [0, 32], sizes = [8, 32], strides = [1, 1]} : vector<8x128xf32> to vector<8x32xf32>
    %359 = vector.extract_strided_slice %356 {offsets = [0, 64], sizes = [8, 32], strides = [1, 1]} : vector<8x128xf32> to vector<8x32xf32>
    %360 = vector.extract_strided_slice %355 {offsets = [0, 96], sizes = [8, 32], strides = [1, 1]} : vector<8x128xf32> to vector<8x32xf32>
    %361 = arith.mulf %358, %305 : vector<8x32xf32>
    %362 = arith.mulf %357, %359 : vector<8x32xf32>
    %363 = arith.addf %361, %362 : vector<8x32xf32>
    %364 = math.tanh %363 : vector<8x32xf32>
    %365 = arith.mulf %360, %364 : vector<8x32xf32>
    %366 = vector.extract_strided_slice %5 {offsets = [56, 0], sizes = [8, 128], strides = [1, 1]} : vector<64x128xf32> to vector<8x128xf32>
    %cst_72 = arith.constant dense<0.000000e+00> : vector<8x128xf32>
    %367 = tpu.matmul %325, %6, %cst_72 {dimension_numbers = #tpu.dot_dimension_numbers<[1], [0], [0], [1], [0, 0, 1, 1], [], []>} : vector<8x32xf32>, vector<32x128xf32>, vector<8x128xf32> -> vector<8x128xf32>
    %368 = arith.addf %366, %367 : vector<8x128xf32>
    %369 = arith.negf %368 : vector<8x128xf32>
    %370 = math.exp %369 : vector<8x128xf32>
    %cst_73 = arith.constant 1.000000e+00 : f32
    %371 = vector.broadcast %cst_73 : f32 to vector<8x128xf32>
    %372 = arith.addf %371, %370 : vector<8x128xf32>
    %373 = arith.divf %371, %372 : vector<8x128xf32>
    %374 = math.tanh %368 : vector<8x128xf32>
    %375 = vector.extract_strided_slice %373 {offsets = [0, 0], sizes = [8, 32], strides = [1, 1]} : vector<8x128xf32> to vector<8x32xf32>
    %376 = vector.extract_strided_slice %373 {offsets = [0, 32], sizes = [8, 32], strides = [1, 1]} : vector<8x128xf32> to vector<8x32xf32>
    %377 = vector.extract_strided_slice %374 {offsets = [0, 64], sizes = [8, 32], strides = [1, 1]} : vector<8x128xf32> to vector<8x32xf32>
    %378 = vector.extract_strided_slice %373 {offsets = [0, 96], sizes = [8, 32], strides = [1, 1]} : vector<8x128xf32> to vector<8x32xf32>
    %379 = arith.mulf %376, %323 : vector<8x32xf32>
    %380 = arith.mulf %375, %377 : vector<8x32xf32>
    %381 = arith.addf %379, %380 : vector<8x32xf32>
    %382 = math.tanh %381 : vector<8x32xf32>
    %383 = arith.mulf %378, %382 : vector<8x32xf32>
    %cst_74 = arith.constant dense<0.000000e+00> : vector<8x128xf32>
    %384 = tpu.matmul %325, %8, %cst_74 {dimension_numbers = #tpu.dot_dimension_numbers<[1], [0], [0], [1], [0, 0, 1, 1], [], []>} : vector<8x32xf32>, vector<32x128xf32>, vector<8x128xf32> -> vector<8x128xf32>
    %cst_75 = arith.constant dense<0.000000e+00> : vector<8x128xf32>
    %385 = tpu.matmul %345, %12, %cst_75 {dimension_numbers = #tpu.dot_dimension_numbers<[1], [0], [0], [1], [0, 0, 1, 1], [], []>} : vector<8x32xf32>, vector<32x128xf32>, vector<8x128xf32> -> vector<8x128xf32>
    %386 = arith.addf %384, %385 : vector<8x128xf32>
    %387 = vector.broadcast %16 : vector<1x128xf32> to vector<8x128xf32>
    %388 = arith.addf %386, %387 : vector<8x128xf32>
    %389 = arith.negf %388 : vector<8x128xf32>
    %390 = math.exp %389 : vector<8x128xf32>
    %cst_76 = arith.constant 1.000000e+00 : f32
    %391 = vector.broadcast %cst_76 : f32 to vector<8x128xf32>
    %392 = arith.addf %391, %390 : vector<8x128xf32>
    %393 = arith.divf %391, %392 : vector<8x128xf32>
    %394 = math.tanh %388 : vector<8x128xf32>
    %395 = vector.extract_strided_slice %393 {offsets = [0, 0], sizes = [8, 32], strides = [1, 1]} : vector<8x128xf32> to vector<8x32xf32>
    %396 = vector.extract_strided_slice %393 {offsets = [0, 32], sizes = [8, 32], strides = [1, 1]} : vector<8x128xf32> to vector<8x32xf32>
    %397 = vector.extract_strided_slice %394 {offsets = [0, 64], sizes = [8, 32], strides = [1, 1]} : vector<8x128xf32> to vector<8x32xf32>
    %398 = vector.extract_strided_slice %393 {offsets = [0, 96], sizes = [8, 32], strides = [1, 1]} : vector<8x128xf32> to vector<8x32xf32>
    %399 = arith.mulf %396, %343 : vector<8x32xf32>
    %400 = arith.mulf %395, %397 : vector<8x32xf32>
    %401 = arith.addf %399, %400 : vector<8x32xf32>
    %402 = math.tanh %401 : vector<8x32xf32>
    %403 = arith.mulf %398, %402 : vector<8x32xf32>
    %cst_77 = arith.constant dense<0.000000e+00> : vector<8x128xf32>
    %404 = tpu.matmul %345, %10, %cst_77 {dimension_numbers = #tpu.dot_dimension_numbers<[1], [0], [0], [1], [0, 0, 1, 1], [], []>} : vector<8x32xf32>, vector<32x128xf32>, vector<8x128xf32> -> vector<8x128xf32>
    %cst_78 = arith.constant dense<0.000000e+00> : vector<8x128xf32>
    %405 = tpu.matmul %365, %14, %cst_78 {dimension_numbers = #tpu.dot_dimension_numbers<[1], [0], [0], [1], [0, 0, 1, 1], [], []>} : vector<8x32xf32>, vector<32x128xf32>, vector<8x128xf32> -> vector<8x128xf32>
    %406 = arith.addf %404, %405 : vector<8x128xf32>
    %407 = vector.broadcast %18 : vector<1x128xf32> to vector<8x128xf32>
    %408 = arith.addf %406, %407 : vector<8x128xf32>
    %409 = arith.negf %408 : vector<8x128xf32>
    %410 = math.exp %409 : vector<8x128xf32>
    %cst_79 = arith.constant 1.000000e+00 : f32
    %411 = vector.broadcast %cst_79 : f32 to vector<8x128xf32>
    %412 = arith.addf %411, %410 : vector<8x128xf32>
    %413 = arith.divf %411, %412 : vector<8x128xf32>
    %414 = math.tanh %408 : vector<8x128xf32>
    %415 = vector.extract_strided_slice %413 {offsets = [0, 0], sizes = [8, 32], strides = [1, 1]} : vector<8x128xf32> to vector<8x32xf32>
    %416 = vector.extract_strided_slice %413 {offsets = [0, 32], sizes = [8, 32], strides = [1, 1]} : vector<8x128xf32> to vector<8x32xf32>
    %417 = vector.extract_strided_slice %414 {offsets = [0, 64], sizes = [8, 32], strides = [1, 1]} : vector<8x128xf32> to vector<8x32xf32>
    %418 = vector.extract_strided_slice %413 {offsets = [0, 96], sizes = [8, 32], strides = [1, 1]} : vector<8x128xf32> to vector<8x32xf32>
    %419 = arith.mulf %416, %363 : vector<8x32xf32>
    %420 = arith.mulf %415, %417 : vector<8x32xf32>
    %421 = arith.addf %419, %420 : vector<8x32xf32>
    %422 = math.tanh %421 : vector<8x32xf32>
    %423 = arith.mulf %418, %422 : vector<8x32xf32>
    %cst_80 = arith.constant dense<0.000000e+00> : vector<8x128xf32>
    %424 = tpu.matmul %383, %8, %cst_80 {dimension_numbers = #tpu.dot_dimension_numbers<[1], [0], [0], [1], [0, 0, 1, 1], [], []>} : vector<8x32xf32>, vector<32x128xf32>, vector<8x128xf32> -> vector<8x128xf32>
    %cst_81 = arith.constant dense<0.000000e+00> : vector<8x128xf32>
    %425 = tpu.matmul %403, %12, %cst_81 {dimension_numbers = #tpu.dot_dimension_numbers<[1], [0], [0], [1], [0, 0, 1, 1], [], []>} : vector<8x32xf32>, vector<32x128xf32>, vector<8x128xf32> -> vector<8x128xf32>
    %426 = arith.addf %424, %425 : vector<8x128xf32>
    %427 = vector.broadcast %16 : vector<1x128xf32> to vector<8x128xf32>
    %428 = arith.addf %426, %427 : vector<8x128xf32>
    %429 = arith.negf %428 : vector<8x128xf32>
    %430 = math.exp %429 : vector<8x128xf32>
    %cst_82 = arith.constant 1.000000e+00 : f32
    %431 = vector.broadcast %cst_82 : f32 to vector<8x128xf32>
    %432 = arith.addf %431, %430 : vector<8x128xf32>
    %433 = arith.divf %431, %432 : vector<8x128xf32>
    %434 = math.tanh %428 : vector<8x128xf32>
    %435 = vector.extract_strided_slice %433 {offsets = [0, 0], sizes = [8, 32], strides = [1, 1]} : vector<8x128xf32> to vector<8x32xf32>
    %436 = vector.extract_strided_slice %433 {offsets = [0, 32], sizes = [8, 32], strides = [1, 1]} : vector<8x128xf32> to vector<8x32xf32>
    %437 = vector.extract_strided_slice %434 {offsets = [0, 64], sizes = [8, 32], strides = [1, 1]} : vector<8x128xf32> to vector<8x32xf32>
    %438 = vector.extract_strided_slice %433 {offsets = [0, 96], sizes = [8, 32], strides = [1, 1]} : vector<8x128xf32> to vector<8x32xf32>
    %439 = arith.mulf %436, %401 : vector<8x32xf32>
    %440 = arith.mulf %435, %437 : vector<8x32xf32>
    %441 = arith.addf %439, %440 : vector<8x32xf32>
    %442 = math.tanh %441 : vector<8x32xf32>
    %443 = arith.mulf %438, %442 : vector<8x32xf32>
    %cst_83 = arith.constant dense<0.000000e+00> : vector<8x128xf32>
    %444 = tpu.matmul %403, %10, %cst_83 {dimension_numbers = #tpu.dot_dimension_numbers<[1], [0], [0], [1], [0, 0, 1, 1], [], []>} : vector<8x32xf32>, vector<32x128xf32>, vector<8x128xf32> -> vector<8x128xf32>
    %cst_84 = arith.constant dense<0.000000e+00> : vector<8x128xf32>
    %445 = tpu.matmul %423, %14, %cst_84 {dimension_numbers = #tpu.dot_dimension_numbers<[1], [0], [0], [1], [0, 0, 1, 1], [], []>} : vector<8x32xf32>, vector<32x128xf32>, vector<8x128xf32> -> vector<8x128xf32>
    %446 = arith.addf %444, %445 : vector<8x128xf32>
    %447 = vector.broadcast %18 : vector<1x128xf32> to vector<8x128xf32>
    %448 = arith.addf %446, %447 : vector<8x128xf32>
    %449 = arith.negf %448 : vector<8x128xf32>
    %450 = math.exp %449 : vector<8x128xf32>
    %cst_85 = arith.constant 1.000000e+00 : f32
    %451 = vector.broadcast %cst_85 : f32 to vector<8x128xf32>
    %452 = arith.addf %451, %450 : vector<8x128xf32>
    %453 = arith.divf %451, %452 : vector<8x128xf32>
    %454 = math.tanh %448 : vector<8x128xf32>
    %455 = vector.extract_strided_slice %453 {offsets = [0, 0], sizes = [8, 32], strides = [1, 1]} : vector<8x128xf32> to vector<8x32xf32>
    %456 = vector.extract_strided_slice %453 {offsets = [0, 32], sizes = [8, 32], strides = [1, 1]} : vector<8x128xf32> to vector<8x32xf32>
    %457 = vector.extract_strided_slice %454 {offsets = [0, 64], sizes = [8, 32], strides = [1, 1]} : vector<8x128xf32> to vector<8x32xf32>
    %458 = vector.extract_strided_slice %453 {offsets = [0, 96], sizes = [8, 32], strides = [1, 1]} : vector<8x128xf32> to vector<8x32xf32>
    %459 = arith.mulf %456, %421 : vector<8x32xf32>
    %460 = arith.mulf %455, %457 : vector<8x32xf32>
    %461 = arith.addf %459, %460 : vector<8x32xf32>
    %462 = math.tanh %461 : vector<8x32xf32>
    %463 = arith.mulf %458, %462 : vector<8x32xf32>
    %cst_86 = arith.constant dense<0.000000e+00> : vector<8x128xf32>
    %464 = tpu.matmul %443, %10, %cst_86 {dimension_numbers = #tpu.dot_dimension_numbers<[1], [0], [0], [1], [0, 0, 1, 1], [], []>} : vector<8x32xf32>, vector<32x128xf32>, vector<8x128xf32> -> vector<8x128xf32>
    %cst_87 = arith.constant dense<0.000000e+00> : vector<8x128xf32>
    %465 = tpu.matmul %463, %14, %cst_87 {dimension_numbers = #tpu.dot_dimension_numbers<[1], [0], [0], [1], [0, 0, 1, 1], [], []>} : vector<8x32xf32>, vector<32x128xf32>, vector<8x128xf32> -> vector<8x128xf32>
    %466 = arith.addf %464, %465 : vector<8x128xf32>
    %467 = vector.broadcast %18 : vector<1x128xf32> to vector<8x128xf32>
    %468 = arith.addf %466, %467 : vector<8x128xf32>
    %469 = arith.negf %468 : vector<8x128xf32>
    %470 = math.exp %469 : vector<8x128xf32>
    %cst_88 = arith.constant 1.000000e+00 : f32
    %471 = vector.broadcast %cst_88 : f32 to vector<8x128xf32>
    %472 = arith.addf %471, %470 : vector<8x128xf32>
    %473 = arith.divf %471, %472 : vector<8x128xf32>
    %474 = math.tanh %468 : vector<8x128xf32>
    %475 = vector.extract_strided_slice %473 {offsets = [0, 0], sizes = [8, 32], strides = [1, 1]} : vector<8x128xf32> to vector<8x32xf32>
    %476 = vector.extract_strided_slice %473 {offsets = [0, 32], sizes = [8, 32], strides = [1, 1]} : vector<8x128xf32> to vector<8x32xf32>
    %477 = vector.extract_strided_slice %474 {offsets = [0, 64], sizes = [8, 32], strides = [1, 1]} : vector<8x128xf32> to vector<8x32xf32>
    %478 = vector.extract_strided_slice %473 {offsets = [0, 96], sizes = [8, 32], strides = [1, 1]} : vector<8x128xf32> to vector<8x32xf32>
    %479 = arith.mulf %476, %461 : vector<8x32xf32>
    %480 = arith.mulf %475, %477 : vector<8x32xf32>
    %481 = arith.addf %479, %480 : vector<8x32xf32>
    %482 = math.tanh %481 : vector<8x32xf32>
    %483 = arith.mulf %478, %482 : vector<8x32xf32>
    %c0_89 = arith.constant 0 : index
    %c0_90 = arith.constant 0 : index
    %484 = vector.load %arg7[%c0_89, %c0_90] : memref<32x16xf32, #tpu.memory_space<vmem>>, vector<32x16xf32>
    %cst_91 = arith.constant dense<0.000000e+00> : vector<8x16xf32>
    %485 = tpu.matmul %483, %484, %cst_91 {dimension_numbers = #tpu.dot_dimension_numbers<[1], [0], [0], [1], [0, 0, 1, 1], [], []>} : vector<8x32xf32>, vector<32x16xf32>, vector<8x16xf32> -> vector<8x16xf32>
    %c0_92 = arith.constant 0 : index
    %c0_93 = arith.constant 0 : index
    %486 = vector.load %arg8[%c0_92, %c0_93] : memref<1x16xf32, #tpu.memory_space<vmem>>, vector<1x16xf32>
    %487 = vector.broadcast %486 : vector<1x16xf32> to vector<8x16xf32>
    %488 = arith.addf %485, %487 : vector<8x16xf32>
    %cst_94 = arith.constant 0.000000e+00 : f32
    %489 = vector.broadcast %cst_94 : f32 to vector<8x16xf32>
    %490 = arith.maximumf %488, %489 : vector<8x16xf32>
    %c0_95 = arith.constant 0 : index
    %c0_96 = arith.constant 0 : index
    %491 = vector.load %arg9[%c0_95, %c0_96] : memref<16x8xf32, #tpu.memory_space<vmem>>, vector<16x8xf32>
    %cst_97 = arith.constant dense<0.000000e+00> : vector<8x8xf32>
    %492 = tpu.matmul %490, %491, %cst_97 {dimension_numbers = #tpu.dot_dimension_numbers<[1], [0], [0], [1], [0, 0, 1, 1], [], []>} : vector<8x16xf32>, vector<16x8xf32>, vector<8x8xf32> -> vector<8x8xf32>
    %c0_98 = arith.constant 0 : index
    %c0_99 = arith.constant 0 : index
    %493 = vector.load %arg10[%c0_98, %c0_99] : memref<1x8xf32, #tpu.memory_space<vmem>>, vector<1x8xf32>
    %494 = vector.broadcast %493 : vector<1x8xf32> to vector<8x8xf32>
    %495 = arith.addf %492, %494 : vector<8x8xf32>
    %c0_100 = arith.constant 0 : index
    %c0_101 = arith.constant 0 : index
    %496 = vector.load %arg11[%c0_100, %c0_101] : memref<8x8xf32, #tpu.memory_space<vmem>>, vector<8x8xf32>
    tpu.vector_store %arg11[%c0_100, %c0_101], %495 {strides = array<i32>} : memref<8x8xf32, #tpu.memory_space<vmem>>, vector<8x8xf32>,
    return
  }
}

</mosaic_0001>

<bundles_post_ra>
// kernel: tpu_custom_call.1
= control target key start
LH: loop header
LB: loop body
LE: loop exit
PB: predicated region body
PF: predicated region fallthrough
CT: control target
= control target key end

     0   :  { %16 = vsyncpa [#allocation3], 0  ;;  %s6106_s0 = inlined_call_operand.vmem [shape: f32[64,48], index: 0, kind: input, shape index: {}]   ;;  %s6107_s1 = inlined_call_operand.hbm [shape: f32[48,128], index: 1, kind: input, shape index: {}]   ;;  %s6108_s2 = inlined_call_operand.hbm [shape: f32[32,128], index: 2, kind: input, shape index: {}]   ;;  %s6109_s3 = inlined_call_operand.hbm [shape: f32[1,128], index: 3, kind: input, shape index: {}]   ;;  %s6110_s4 = inlined_call_operand.vmem [shape: f32[2,32,128], index: 4, kind: input, shape index: {}]   ;;  %s6111_s5 = inlined_call_operand.vmem [shape: f32[2,32,128], index: 5, kind: input, shape index: {}]   ;;  %s6112_s6 = inlined_call_operand.vmem [shape: f32[2,1,128], index: 6, kind: input, shape index: {}]   ;;  %s6113_s7 = inlined_call_operand.vmem [shape: f32[32,16], index: 7, kind: input, shape index: {}]   ;;  %s6114_s8 = inlined_call_operand.vmem [shape: f32[1,16], index: 8, kind: input, shape index: {}]   ;;  %s6115_s9 = inlined_call_operand.vmem [shape: f32[16,8], index: 9, kind: input, shape index: {}]   ;;  %s6116_s10 = inlined_call_operand.vmem [shape: f32[1,8], index: 10, kind: input, shape index: {}]   ;;  %s6117_s11 = inlined_call_operand.hbm [shape: f32[8,8], index: 11, kind: output, shape index: {}]  }
   0x1   :  { %17 = vsyncpa [#allocation6], 0 }
   0x2   :  { %18 = vsyncpa [#allocation4], 0  ;;  %s5323_s17 = smov [#allocation5]   ;;  %s5324_s19 = smov [#allocation2]  }
   0x3   :  { %s38_s18 = sshll.u32 %s5323_s17, 4  ;;  %s26_s20 = sshll.u32 %s5324_s19, 4  ;;  %s39_s18 = int_to_ptr.vmem [resolvable:$true] %s38_s18  ;;  %s5394_s20 = int_to_ptr.vmem [resolvable:$true] %s26_s20 }
   0x4   :  { %s5229_s23 = scalar_lea.hbm %s6108_s2, 512 }
   0x5   :  { %p5230_p0 = scmp.ne.s32.totalorder %s6108_s2, %s5229_s23  ;;  %p5233_p1 = scmp.lt.u32.totalorder %s5229_s23, %s6108_s2 }
   0x7   :  { %p5235_p2 = pnand %p5233_p1, %p5230_p0 }
   0x9   :  { %5238 = shalt.err (!%p5235_p2)
}
   0xa   :  { %s5239_s28 = scalar_lea.vmem %s39_s18, 512  ;;  %p5244_p4 = scmp.lt.s32.totalorder %s39_s18, %s39_s18 }
   0xb   :  { %p5240_p3 = scmp.ne.s32.totalorder %s39_s18, %s5239_s28  ;;  %p5245_p5 = scmp.lt.s32.totalorder %s5239_s28, %s5239_s28 }
   0xd   :  { %p5246_p6 = por %p5245_p5, %p5244_p4 }
   0xf   :  { %p5247_p7 = pnand %p5246_p6, %p5240_p3 }
  0x11   :  { %5250 = shalt.err (!%p5247_p7)
}
  0x12   :  { %s5325_s29 = smov 128   ;;  %s5326_s30 = smov 8  }
  0x13   :  { %44 = dma.hbm_to_vmem [thread:$0]  %s6108_s2, 512, %s39_s18, [#allocation6], %s5325_s29, %s5325_s29, %s5326_s30  }
  0x14   :  { %s5251_s16 = scalar_lea.hbm %s6107_s1, 768 }
  0x15   :  { %p5252_p8 = scmp.ne.s32.totalorder %s6107_s1, %s5251_s16  ;;  %p5255_p9 = scmp.lt.u32.totalorder %s5251_s16, %s6107_s1 }
  0x17   :  { %p5257_p10 = pnand %p5255_p9, %p5252_p8 }
  0x19   :  { %5260 = shalt.err (!%p5257_p10)
}
  0x1a   :  { %s5261_s23 = scalar_lea.vmem %s5394_s20, 768  ;;  %p5266_p12 = scmp.lt.s32.totalorder %s5394_s20, %s5394_s20 }
  0x1b   :  { %p5262_p11 = scmp.ne.s32.totalorder %s5394_s20, %s5261_s23  ;;  %p5267_p13 = scmp.lt.s32.totalorder %s5261_s23, %s5261_s23 }
  0x1d   :  { %p5268_p0 = por %p5267_p13, %p5266_p12 }
  0x1f   :  { %p5269_p1 = pnand %p5268_p0, %p5262_p11 }
  0x21   :  { %5272 = shalt.err (!%p5269_p1)
}
  0x22   :  { %32 = dma.hbm_to_vmem [thread:$0]  %s6107_s1, 768, %s5394_s20, [#allocation3], %s5325_s29, %s5325_s29, %s5326_s30  }
  0x23   :  { %s5327_s24 = smov [#allocation7]   ;;  %s5273_s28 = scalar_lea.hbm %s6109_s3, 16 }
  0x24   :  { %s51_s25 = sshll.u32 %s5327_s24, 4  ;;  %p5274_p2 = scmp.ne.s32.totalorder %s6109_s3, %s5273_s28  ;;  %s52_s25 = int_to_ptr.vmem [resolvable:$true] %s51_s25 }
  0x25   :  { %p5277_p3 = scmp.lt.u32.totalorder %s5273_s28, %s6109_s3 }
  0x27   :  { %p5279_p4 = pnand %p5277_p3, %p5274_p2 }
  0x29   :  { %5282 = shalt.err (!%p5279_p4)
}
  0x2a   :  { %s5283_s16 = scalar_lea.vmem %s52_s25, 16  ;;  %s5287_s1 = scalar_lea.vmem %s52_s25, 32 }
  0x2b   :  { %p5284_p5 = scmp.ne.s32.totalorder %s52_s25, %s5283_s16  ;;  %p5288_p6 = scmp.lt.s32.totalorder %s52_s25, %s52_s25 }
  0x2c   :  { %p5289_p7 = scmp.lt.s32.totalorder %s5287_s1, %s5283_s16 }
  0x2e   :  { %p5290_p8 = por %p5289_p7, %p5288_p6 }
  0x30   :  { %p5291_p9 = pnand %p5290_p8, %p5284_p5 }
  0x32   :  { %5294 = shalt.err (!%p5291_p9)
}
  0x33   :  { %54 = dma.hbm_to_vmem [thread:$0]  %s6109_s3, 16, %s52_s25, [#allocation6]  }
  0x34   :  { %5317 = dma.done.wait [#allocation3], 768  }
  0x35   :  { %5318 = vsyncadd [#allocation3], 4294966528 }
  0x36   :  { %5319 = dma.done.wait [#allocation6], 528  }
  0x37   :  { %5320 = vsyncadd [#allocation6], 4294966768  ;;  %v5328_v0 = vmov 0.0|0.0   ;;  %vm5329_vm0 = vmmov 0   ;;  %v5330_v1 = vmov 0.0   ;;  %v86_v2 = vld [vmem:[#allocation2] sm:$0xff] }
  0x38   :  { %4774 = vmatprep.subr.bf16.mxu1 %v5328_v0  ;;  %4312 = vmatprep.mubr.msk.f32.mxu1 %vm5329_vm0, %v5330_v1  ;;  %v87_v3 = vld [vmem:[#allocation2 + $0x8] sm:$0xff]  ;;  %v88_v4 = vld [vmem:[#allocation2 + $0x10] sm:$0xff]  ;;  %vm99_vm1 = vcmask 392192   ;;  %v89_v6 = vld [vmem:[#allocation2 + $0x18] sm:$0xff]  ;;  %s5331_s21 = smov 64   ;;  %s5332_s22 = smov 32  }
  0x39   :  { %v4762_v5 = vpack.c.bf16 %v87_v3, %v86_v2  ;;  %v229_v7 = vld [vmem:[#allocation5] sm:$0xff]  ;;  %v230_v8 = vld [vmem:[#allocation5 + $0x8] sm:$0xff]  ;;  %v4766_v9 = vpack.c.bf16 %v89_v6, %v88_v4  ;;  %v90_v11 = vld [vmem:[#allocation2 + $0x20] sm:$0xff]  ;;  %vm254_vm2 = vcmask 261120   ;;  %vm3881_vm3 = vcmask 130048  }
  0x3a   :  { %v5440_v10 = vpack.c.bf16 %v230_v8, %v229_v7  ;;  %v91_v12 = vld [vmem:[#allocation2 + $0x28] sm:$0xff]  ;;  %v78_v13 = vld [vmem:[%s6106_s0] sm:$0xff]  ;;  %v5464_v21 = vld [vmem:[#allocation7] ss:$0 sm:$0xff]  ;;  %vm3955_vm4 = vcmask 64512  }
  0x3b   :  { %4763 = vmatprep.subr.bf16.mxu0 %v4762_v5  ;;  %4292 = vmatprep.mubr.msk.f32.mxu0 %vm99_vm1, %v78_v13  ;;  %v231_v14 = vld [vmem:[#allocation5 + $0x10] sm:$0xff]  ;;  %v232_v15 = vld [vmem:[#allocation5 + $0x18] sm:$0xff]  ;;  %v4770_v17 = vpack.c.bf16 %v91_v12, %v90_v11  ;;  %v80_v36 = vld [vmem:[%s6106_s0 + $0x10] sm:$0xff] }
  0x3c   :  { %4765 = vmatpush3.bf16.msra.mxu0 %v4762_v5  ;;  %4776 = vmatpush3.bf16.msra.mxu1 %v5440_v10  ;;  %v5447_v16 = vpack.c.bf16 %v232_v15, %v231_v14  ;;  %v79_v18 = vld [vmem:[%s6106_s0 + $0x8] sm:$0xff]  ;;  %v81_v37 = vld [vmem:[%s6106_s0 + $0x18] sm:$0xff]  ;;  %v82_v38 = vld [vmem:[%s6106_s0 + $0x20] sm:$0xff] }
  0x3d   :  { %4767 = vmatprep.subr.bf16.mxu0 %v4766_v9  ;;  %4777 = vmatprep.subr.bf16.mxu1 %v5328_v0  ;;  %v233_v39 = vld [vmem:[%s6110_s4] sm:$0xff]  ;;  %v234_v40 = vld [vmem:[%s6110_s4 + $0x8] sm:$0xff]  ;;  %v235_v42 = vld [vmem:[%s6110_s4 + $0x10] sm:$0xff] }
  0x3e   :  { %v5491_v41 = vpack.c.bf16 %v234_v40, %v233_v39  ;;  %v83_v43 = vld [vmem:[%s6106_s0 + $0x28] sm:$0xff]  ;;  %v236_v44 = vld [vmem:[%s6110_s4 + $0x18] sm:$0xff]  ;;  %v84_v45 = vld [vmem:[%s6106_s0 + $0x30] sm:$0xff] }
  0x3f   :  { %v5507_v46 = vpack.c.bf16 %v236_v44, %v235_v42  ;;  %v85_v47 = vld [vmem:[%s6106_s0 + $0x38] sm:$0xff]  ;;  %v242_v57 = vld [vmem:[%s6111_s5] sm:$0xff]  ;;  %v243_v58 = vld [vmem:[%s6111_s5 + $0x8] sm:$0xff]  ;;  %s5333_s0 = smov [#allocation8]  }
  0x40   :  { %4769 = vmatpush3.bf16.msra.mxu0 %v4766_v9  ;;  %4779 = vmatpush3.bf16.msra.mxu1 %v5447_v16  ;;  %v5540_v59 = vpack.c.bf16 %v243_v58, %v242_v57  ;;  %v244_v60 = vld [vmem:[%s6111_s5 + $0x10] sm:$0xff]  ;;  %v245_v61 = vld [vmem:[%s6111_s5 + $0x18] sm:$0xff]  ;;  %v5576_v8 = vld [vmem:[%s6112_s6] ss:$0 sm:$0xff]  ;;  %s3963_s23 = sshll.u32 %s5333_s0, 4  ;;  %s3964_s23 = int_to_ptr.vmem [resolvable:$true] %s3963_s23 }
  0x41   :  { %4771 = vmatprep.subr.bf16.mxu0 %v4770_v17  ;;  %4780 = vmatprep.subr.bf16.mxu1 %v5328_v0  ;;  %v5551_v63 = vpack.c.bf16 %v245_v61, %v244_v60  ;;  %v3982_v44 = vld [vmem:[%s6110_s4 + $0x20] sm:$0xff]  ;;  %v3985_v57 = vld [vmem:[%s6110_s4 + $0x38] sm:$0xff]  ;;  %v3988_v60 = vld [vmem:[%s6111_s5 + $0x30] sm:$0xff]  ;;  %p5300_p11 = scmp.lt.s32.totalorder %s3964_s23, %s3964_s23 }
  0x42   :  { %v3989_v61 = vld [vmem:[%s6111_s5 + $0x38] sm:$0xff] }
  0x43   :  { %4313 = vmatmul.mubr.f32.vlgmr.msra.gmra.mrb[0].mxu1 %v5330_v1 }
  0x44   :  { %4773 = vmatpush3.bf16.msra.mxu0 %v4770_v17  ;;  %4782 = vmatpush3.bf16.msra.mxu1 %v5440_v10 }
  0x45   :  { %4792 = vmatprep.subr.bf16.mxu0 %v5328_v0  ;;  %4783 = vmatprep.subr.bf16.mxu1 %v5328_v0 }
  0x46   :  { %4323 = vmatprep.mubr.msk.f32.mxu1 %vm5329_vm0, %v5330_v1 }
  0x47   :  { %4293 = vmatmul.mubr.msk.f32.vlgmr.msra.gmra.mrb[0].mxu0 %vm99_vm1, %v79_v18 }
  0x48   :  { %4785 = vmatpush3.bf16.msra.mxu1 %v5447_v16  ;;  %4295 = vmatprep.mubr.msk.f32.mxu0 %vm99_vm1, %v80_v36 }
  0x49   :  { %4786 = vmatprep.subr.bf16.mxu1 %v5328_v0  ;;  %4794 = vmatpush3.bf16.msra.mxu0 %v5491_v41 }
  0x4a   :  { %4795 = vmatprep.subr.bf16.mxu0 %v5328_v0 }
  0x4b   :  { %4296 = vmatmul.mubr.msk.f32.gmra.mrb[2].mxu0 %vm99_vm1, %v81_v37 }
  0x4c   :  { %4298 = vmatprep.mubr.msk.f32.mxu0 %vm99_vm1, %v82_v38 }
  0x4d   :  { %4797 = vmatpush3.bf16.msra.mxu0 %v5507_v46 }
  0x4e   :  { %4804 = vmatprep.subr.bf16.mxu0 %v5328_v0 }
  0x4f   :  { %4299 = vmatmul.mubr.msk.f32.gmra.mrb[4].mxu0 %vm99_vm1, %v83_v43 }
  0x50   :  { %4301 = vmatprep.mubr.msk.f32.mxu0 %vm99_vm1, %v84_v45  ;;  %v3983_v45 = vld [vmem:[%s6110_s4 + $0x28] sm:$0xff] }
  0x53   :  { %4302 = vmatmul.mubr.msk.f32.gmra.mrb[6].mxu0 %vm99_vm1, %v85_v47  ;;  %v3986_v47 = vld [vmem:[%s6111_s5 + $0x20] sm:$0xff] }
  0x54   :  { %4345 = vmatprep.mubr.msk.f32.mxu0 %vm5329_vm0, %v5330_v1 }
 0x116   :  { %v324_v19 = vpop.f32.mrb[0].mxu1 }
 0x117   :  { %v4314_v20 = vpop.f32.mrb[1].mxu1 }
 0x11a   :  { %v5466_v22 = vpop.f32.mrb[0].mxu0 }
 0x11b   :  { %v190_v23 = vpop.f32.mrb[1].mxu0  ;;  %v196_v2 = vadd.f32 %v5466_v22, %v5464_v21 }
 0x11c   :  { %v191_v24 = vadd.f32 %v5464_v21, %v190_v23 }
 0x11e   :  { %v328_v25 = vadd.f32 %v324_v19, %v191_v24  ;;  %v5522_v51 = vpop.f32.mrb[2].mxu0 }
 0x11f   :  { %v5524_v52 = vpop.f32.mrb[3].mxu0 }
 0x120   :  { %5034 = vtanh.f32 %v328_v25  ;;  %v3991_v27 = vmul.f32 -1.442695, %v328_v25 }
 0x122   :  { %5036 = vpow2.f32 %v3991_v27  ;;  %v5526_v53 = vpop.f32.mrb[4].mxu0 }
 0x123   :  { %v5528_v54 = vpop.f32.mrb[5].mxu0 }
 0x126   :  { %v5530_v55 = vpop.f32.mrb[6].mxu0 }
 0x127   :  { %v5532_v56 = vpop.f32.mrb[7].mxu0 }
 0x12a   :  { %v5035_v26 = vpop.eup %5034 }
 0x12b   :  { %338 = vrot.lane.b32.xlu0 %v5035_v26, %s5331_s21 }
 0x12c   :  { %v5037_v28 = vpop.eup %5036 }
 0x12d   :  { %v332_v29 = vadd.f32 1.0, %v5037_v28 }
 0x12f   :  { %5038 = vrcp.f32 %v332_v29 }
 0x139   :  { %v5039_v30 = vpop.eup %5038 }
 0x13a   :  { %v336_v33 = vmul.f32 0.0, %v5039_v30 }
 0x19d   :  { %v339_v31 = vpop.permute.xlu0 %338 }
 0x19e   :  { %v341_v32 = vmul.f32 %v5039_v30, %v339_v31 }
 0x1a0   :  { %343 = vrot.lane.b32.xlu0 %v341_v32, %s5332_s22 }
 0x212   :  { %v344_v34 = vpop.permute.xlu0 %343 }
 0x213   :  { %v5471_v35 = vadd.f32 %v344_v34, %v336_v33 }
 0x215   :  { %5040 = vtanh.f32 %v5471_v35 }
 0x21f   :  { %v5041_v48 = vpop.eup %5040 }
 0x220   :  { %349 = vrot.lane.b32.xlu1 %v5041_v48, %s5331_s21  ;;  %v3987_v48 = vld [vmem:[%s6111_s5 + $0x28] sm:$0xff] }
 0x221   :  { %v5621_v58 = vpack.c.bf16 %v3987_v48, %v3986_v47 }
 0x292   :  { %v350_v49 = vpop.permute.xlu1 %349 }
 0x293   :  { %v352_v50 = vmul.f32 %v5039_v30, %v350_v49  ;;  %v5612_v49 = vpack.c.bf16 %v3983_v45, %v3982_v44 }
 0x295   :  { %354 = vrot.lane.b32.xlu1 %v352_v50, %s5332_s22  ;;  %v3984_v50 = vld [vmem:[%s6110_s4 + $0x30] sm:$0xff] }
 0x307   :  { %v355_v62 = vpop.permute.xlu1 %354 }
 0x308   :  { %4324 = vmatmul.mubr.msk.f32.vlgmr.msra.gmra.mrb[2].mxu1 %vm254_vm2, %v355_v62  ;;  %4346 = vmatmul.mubr.msk.f32.vlgmr.msra.gmra.mrb[8].mxu0 %vm254_vm2, %v355_v62 }
 0x309   :  { %4788 = vmatpush3.bf16.msra.mxu1 %v5540_v59  ;;  %4334 = vmatprep.mubr.msk.f32.mxu1 %vm5329_vm0, %v5330_v1 }
 0x30a   :  { %4789 = vmatprep.subr.bf16.mxu1 %v5328_v0  ;;  %4806 = vmatpush3.bf16.msra.mxu0 %v5540_v59 }
 0x30b   :  { %4807 = vmatprep.subr.bf16.mxu0 %v5328_v0  ;;  %4367 = vmatprep.mubr.msk.f32.mxu0 %vm5329_vm0, %v5330_v1 }
 0x30d   :  { %4791 = vmatpush3.bf16.msra.mxu1 %v5551_v63 }
 0x30e   :  { %4798 = vmatprep.subr.bf16.mxu1 %v5328_v0  ;;  %4809 = vmatpush3.bf16.msra.mxu0 %v5551_v63 }
 0x30f   :  { %4816 = vmatprep.subr.bf16.mxu0 %v5328_v0 }
 0x310   :  { %4335 = vmatmul.mubr.f32.vlgmr.msra.gmra.mrb[4].mxu1 %v5330_v1 }
 0x311   :  { %4800 = vmatpush3.bf16.msra.mxu1 %v5440_v10  ;;  %4356 = vmatprep.mubr.msk.f32.mxu1 %vm5329_vm0, %v5330_v1 }
 0x312   :  { %4801 = vmatprep.subr.bf16.mxu1 %v5328_v0 }
 0x315   :  { %4803 = vmatpush3.bf16.msra.mxu1 %v5447_v16 }
 0x316   :  { %4810 = vmatprep.subr.bf16.mxu1 %v5328_v0 }
 0x3db   :  { %v424_v3 = vpop.f32.mrb[2].mxu1  ;;  %v589_v4 = vpop.f32.mrb[8].mxu0 }
 0x3dc   :  { %v428_v5 = vadd.f32 %v424_v3, %v196_v2  ;;  %v4325_v6 = vpop.f32.mrb[3].mxu1  ;;  %v4347_v7 = vpop.f32.mrb[9].mxu0  ;;  %v5631_v2 = vpack.c.bf16 %v3985_v57, %v3984_v50  ;;  %v5638_v3 = vpack.c.bf16 %v3989_v61, %v3988_v60 }
 0x3de   :  { %5042 = vtanh.f32 %v428_v5  ;;  %v3993_v17 = vmul.f32 -1.442695, %v428_v5 }
 0x3e3   :  { %v519_v9 = vpop.f32.mrb[4].mxu1 }
 0x3e4   :  { %v590_v11 = vadd.f32 %v589_v4, %v519_v9  ;;  %v4336_v12 = vpop.f32.mrb[5].mxu1  ;;  %v201_v4 = vadd.f32 %v5464_v21, %v5524_v52  ;;  %v5668_v52 = vld [vmem:[%s6112_s6 + $0x1] ss:$0 sm:$0xff] }
 0x3e6   :  { %v599_v13 = vadd.f32 %v5576_v8, %v590_v11 }
 0x3e8   :  { %v5043_v14 = vpop.eup %5042  ;;  %5044 = vtanh.f32 %v599_v13  ;;  %v3996_v18 = vmul.f32 -1.442695, %v599_v13 }
 0x3e9   :  { %438 = vrot.lane.b32.xlu0 %v5043_v14, %s5331_s21  ;;  %5046 = vpow2.f32 %v3993_v17 }
 0x3ea   :  { %5048 = vpow2.f32 %v3996_v18 }
 0x3f2   :  { %v5045_v15 = vpop.eup %5044 }
 0x3f3   :  { %609 = vrot.lane.b32.xlu1 %v5045_v15, %s5331_s21  ;;  %v5047_v19 = vpop.eup %5046 }
 0x3f4   :  { %v432_v20 = vadd.f32 1.0, %v5047_v19  ;;  %v5049_v22 = vpop.eup %5048 }
 0x3f5   :  { %v603_v23 = vadd.f32 1.0, %v5049_v22 }
 0x3f6   :  { %5050 = vrcp.f32 %v432_v20 }
 0x3f7   :  { %5052 = vrcp.f32 %v603_v23 }
 0x400   :  { %v5051_v24 = vpop.eup %5050 }
 0x401   :  { %v5053_v27 = vpop.eup %5052  ;;  %v436_v30 = vmul.f32 %v5051_v24, %v5471_v35 }
 0x402   :  { %v607_v33 = vmul.f32 0.0, %v5053_v27 }
 0x45b   :  { %v439_v25 = vpop.permute.xlu0 %438 }
 0x45c   :  { %v441_v26 = vmul.f32 %v5051_v24, %v439_v25 }
 0x45e   :  { %443 = vrot.lane.b32.xlu0 %v441_v26, %s5332_s22 }
 0x465   :  { %v610_v28 = vpop.permute.xlu1 %609 }
 0x466   :  { %v612_v29 = vmul.f32 %v5053_v27, %v610_v28 }
 0x468   :  { %614 = vrot.lane.b32.xlu1 %v612_v29, %s5332_s22 }
 0x4d0   :  { %v444_v31 = vpop.permute.xlu0 %443 }
 0x4d1   :  { %v5584_v32 = vadd.f32 %v444_v31, %v436_v30 }
 0x4d3   :  { %5054 = vtanh.f32 %v5584_v32 }
 0x4da   :  { %v615_v34 = vpop.permute.xlu1 %614 }
 0x4db   :  { %v5587_v36 = vadd.f32 %v615_v34, %v607_v33 }
 0x4dd   :  { %v5055_v37 = vpop.eup %5054  ;;  %5056 = vtanh.f32 %v5587_v36 }
 0x4de   :  { %449 = vrot.lane.b32.xlu0 %v5055_v37, %s5331_s21 }
 0x4e7   :  { %v5057_v38 = vpop.eup %5056 }
 0x4e8   :  { %620 = vrot.lane.b32.xlu1 %v5057_v38, %s5331_s21 }
 0x550   :  { %v450_v39 = vpop.permute.xlu0 %449 }
 0x551   :  { %v452_v40 = vmul.f32 %v5051_v24, %v450_v39 }
 0x553   :  { %625 = vrot.lane.b32.xlu0 %v452_v40, %s5332_s22 }
 0x55a   :  { %v621_v35 = vpop.permute.xlu1 %620 }
 0x55b   :  { %v623_v42 = vmul.f32 %v5053_v27, %v621_v35 }
 0x55d   :  { %725 = vrot.lane.b32.xlu1 %v623_v42, %s5332_s22 }
 0x5c5   :  { %v626_v43 = vpop.permute.xlu0 %625 }
 0x5c6   :  { %4357 = vmatmul.mubr.msk.f32.vlgmr.msra.gmra.mrb[6].mxu1 %vm254_vm2, %v626_v43 }
 0x5c7   :  { %4812 = vmatpush3.bf16.msra.mxu1 %v5491_v41  ;;  %4378 = vmatprep.mubr.msk.f32.mxu1 %vm5329_vm0, %v5330_v1 }
 0x5c8   :  { %4813 = vmatprep.subr.bf16.mxu1 %v5328_v0 }
 0x5cb   :  { %4815 = vmatpush3.bf16.msra.mxu1 %v5507_v46 }
 0x5cc   :  { %4822 = vmatprep.subr.bf16.mxu1 %v5328_v0 }
 0x5ce   :  { %4379 = vmatmul.mubr.msk.f32.vlgmr.msra.gmra.mrb[8].mxu1 %vm254_vm2, %v626_v43 }
 0x5cf   :  { %4824 = vmatpush3.bf16.msra.mxu1 %v5612_v49  ;;  %v726_v62 = vpop.permute.xlu1 %725  ;;  %4400 = vmatprep.mubr.msk.f32.mxu1 %vm5329_vm0, %v5330_v1 }
 0x5d0   :  { %4368 = vmatmul.mubr.msk.f32.vlgmr.msra.gmra.mrb[10].mxu0 %vm254_vm2, %v726_v62  ;;  %4825 = vmatprep.subr.bf16.mxu1 %v5328_v0 }
 0x5d1   :  { %4818 = vmatpush3.bf16.msra.mxu0 %v5621_v58  ;;  %4389 = vmatprep.mubr.msk.f32.mxu0 %vm5329_vm0, %v5330_v1 }
 0x5d2   :  { %4819 = vmatprep.subr.bf16.mxu0 %v5328_v0 }
 0x5d3   :  { %4827 = vmatpush3.bf16.msra.mxu1 %v5631_v2 }
 0x5d4   :  { %4834 = vmatprep.subr.bf16.mxu1 %v5328_v0 }
 0x5d5   :  { %4821 = vmatpush3.bf16.msra.mxu0 %v5638_v3 }
 0x5d6   :  { %4401 = vmatmul.mubr.msk.f32.vlgmr.msra.gmra.mrb[10].mxu1 %vm254_vm2, %v726_v62  ;;  %4828 = vmatprep.subr.bf16.mxu0 %v5328_v0 }
 0x5d7   :  { %4836 = vmatpush3.bf16.msra.mxu1 %v5540_v59  ;;  %4422 = vmatprep.mubr.msk.f32.mxu1 %vm5329_vm0, %v5330_v1 }
 0x5d8   :  { %4390 = vmatmul.mubr.f32.vlgmr.msra.gmra.mrb[12].mxu0 %v5330_v1  ;;  %4837 = vmatprep.subr.bf16.mxu1 %v5328_v0 }
 0x5d9   :  { %4830 = vmatpush3.bf16.msra.mxu0 %v5440_v10  ;;  %4411 = vmatprep.mubr.msk.f32.mxu0 %vm5329_vm0, %v5330_v1 }
 0x5da   :  { %4831 = vmatprep.subr.bf16.mxu0 %v5328_v0 }
 0x5db   :  { %4839 = vmatpush3.bf16.msra.mxu1 %v5551_v63 }
 0x5dc   :  { %4846 = vmatprep.subr.bf16.mxu1 %v5328_v0 }
 0x5dd   :  { %4833 = vmatpush3.bf16.msra.mxu0 %v5447_v16 }
 0x5de   :  { %4840 = vmatprep.subr.bf16.mxu0 %v5328_v0 }
 0x699   :  { %v695_v5 = vpop.f32.mrb[6].mxu1 }
 0x69a   :  { %v699_v6 = vadd.f32 %v695_v5, %v201_v4  ;;  %v4358_v7 = vpop.f32.mrb[7].mxu1 }
 0x69c   :  { %5058 = vtanh.f32 %v699_v6  ;;  %v3998_v27 = vmul.f32 -1.442695, %v699_v6 }
 0x6a1   :  { %v865_v9 = vpop.f32.mrb[8].mxu1 }
 0x6a2   :  { %v4380_v11 = vpop.f32.mrb[9].mxu1 }
 0x6a3   :  { %v795_v12 = vpop.f32.mrb[10].mxu0 }
 0x6a4   :  { %v866_v13 = vadd.f32 %v865_v9, %v795_v12  ;;  %v4369_v14 = vpop.f32.mrb[11].mxu0 }
 0x6a6   :  { %v5059_v15 = vpop.eup %5058  ;;  %v869_v17 = vadd.f32 %v5576_v8, %v866_v13 }
 0x6a7   :  { %709 = vrot.lane.b32.xlu0 %v5059_v15, %s5331_s21 }
 0x6a8   :  { %5060 = vtanh.f32 %v869_v17  ;;  %v4001_v28 = vmul.f32 -1.442695, %v869_v17 }
 0x6a9   :  { %v1030_v18 = vpop.f32.mrb[10].mxu1 }
 0x6aa   :  { %v4402_v19 = vpop.f32.mrb[11].mxu1 }
 0x6ab   :  { %v960_v20 = vpop.f32.mrb[12].mxu0 }
 0x6ac   :  { %v1031_v22 = vadd.f32 %v1030_v18, %v960_v20  ;;  %v4391_v23 = vpop.f32.mrb[13].mxu0 }
 0x6ae   :  { %v1040_v24 = vadd.f32 %v5668_v52, %v1031_v22  ;;  %v206_v22 = vadd.f32 %v5522_v51, %v5464_v21 }
 0x6b0   :  { %5062 = vtanh.f32 %v1040_v24  ;;  %v4004_v31 = vmul.f32 -1.442695, %v1040_v24 }
 0x6b1   :  { %5064 = vpow2.f32 %v3998_v27 }
 0x6b2   :  { %v5061_v25 = vpop.eup %5060  ;;  %5066 = vpow2.f32 %v4001_v28 }
 0x6b3   :  { %879 = vrot.lane.b32.xlu1 %v5061_v25, %s5331_s21 }
 0x6ba   :  { %v5063_v26 = vpop.eup %5062 }
 0x6bb   :  { %1050 = vrot.lane.b32.xlu0 %v5063_v26, %s5331_s21  ;;  %v5065_v29 = vpop.eup %5064 }
 0x6bc   :  { %v703_v30 = vadd.f32 1.0, %v5065_v29  ;;  %v5067_v33 = vpop.eup %5066 }
 0x6bd   :  { %v873_v34 = vadd.f32 1.0, %v5067_v33 }
 0x6be   :  { %5068 = vrcp.f32 %v703_v30 }
 0x6bf   :  { %5070 = vpow2.f32 %v4004_v31 }
 0x6c0   :  { %5072 = vrcp.f32 %v873_v34 }
 0x6c8   :  { %v5069_v37 = vpop.eup %5068 }
 0x6c9   :  { %v5071_v40 = vpop.eup %5070  ;;  %v707_v50 = vmul.f32 %v5069_v37, %v5584_v32 }
 0x6ca   :  { %v1044_v35 = vadd.f32 1.0, %v5071_v40  ;;  %v5073_v42 = vpop.eup %5072 }
 0x6cb   :  { %v877_v61 = vmul.f32 %v5073_v42, %v5587_v36 }
 0x6cc   :  { %5074 = vrcp.f32 %v1044_v35 }
 0x6d6   :  { %v5075_v45 = vpop.eup %5074 }
 0x6d7   :  { %v1048_v6 = vmul.f32 0.0, %v5075_v45 }
 0x719   :  { %v710_v38 = vpop.permute.xlu0 %709 }
 0x71a   :  { %v712_v39 = vmul.f32 %v5069_v37, %v710_v38 }
 0x71c   :  { %714 = vrot.lane.b32.xlu1 %v712_v39, %s5332_s22 }
 0x725   :  { %v880_v43 = vpop.permute.xlu1 %879 }
 0x726   :  { %v882_v44 = vmul.f32 %v5073_v42, %v880_v43 }
 0x728   :  { %884 = vrot.lane.b32.xlu0 %v882_v44, %s5332_s22 }
 0x72d   :  { %v1051_v47 = vpop.permute.xlu0 %1050 }
 0x72e   :  { %v1053_v48 = vmul.f32 %v5075_v45, %v1051_v47 }
 0x730   :  { %1055 = vrot.lane.b32.xlu1 %v1053_v48, %s5332_s22 }
 0x78e   :  { %v715_v57 = vpop.permute.xlu1 %714 }
 0x78f   :  { %v5677_v60 = vadd.f32 %v715_v57, %v707_v50 }
 0x791   :  { %5076 = vtanh.f32 %v5677_v60 }
 0x79a   :  { %v885_v62 = vpop.permute.xlu0 %884 }
 0x79b   :  { %v5077_v4 = vpop.eup %5076  ;;  %v5681_v5 = vadd.f32 %v885_v62, %v877_v61 }
 0x79c   :  { %720 = vrot.lane.b32.xlu0 %v5077_v4, %s5331_s21 }
 0x79d   :  { %5078 = vtanh.f32 %v5681_v5 }
 0x7a2   :  { %v1056_v7 = vpop.permute.xlu1 %1055 }
 0x7a3   :  { %v5685_v9 = vadd.f32 %v1056_v7, %v1048_v6 }
 0x7a5   :  { %5080 = vtanh.f32 %v5685_v9 }
 0x7a7   :  { %v5079_v32 = vpop.eup %5078 }
 0x7a8   :  { %890 = vrot.lane.b32.xlu1 %v5079_v32, %s5331_s21 }
 0x7af   :  { %v5081_v11 = vpop.eup %5080 }
 0x7b0   :  { %1061 = vrot.lane.b32.xlu0 %v5081_v11, %s5331_s21 }
 0x80e   :  { %v721_v36 = vpop.permute.xlu0 %720 }
 0x80f   :  { %v723_v12 = vmul.f32 %v5069_v37, %v721_v36 }
 0x811   :  { %1066 = vrot.lane.b32.xlu1 %v723_v12, %s5332_s22 }
 0x81a   :  { %v891_v13 = vpop.permute.xlu1 %890 }
 0x81b   :  { %v893_v14 = vmul.f32 %v5073_v42, %v891_v13 }
 0x81d   :  { %1166 = vrot.lane.b32.xlu0 %v893_v14, %s5332_s22 }
 0x822   :  { %v1062_v15 = vpop.permute.xlu0 %1061 }
 0x823   :  { %v1064_v17 = vmul.f32 %v5075_v45, %v1062_v15 }
 0x825   :  { %1336 = vrot.lane.b32.xlu1 %v1064_v17, %s5332_s22 }
 0x883   :  { %v1067_v18 = vpop.permute.xlu1 %1066 }
 0x884   :  { %4412 = vmatmul.mubr.msk.f32.vlgmr.msra.gmra.mrb[14].mxu0 %vm254_vm2, %v1067_v18 }
 0x885   :  { %4842 = vmatpush3.bf16.msra.mxu0 %v5491_v41  ;;  %4433 = vmatprep.mubr.msk.f32.mxu0 %vm5329_vm0, %v5330_v1 }
 0x886   :  { %4843 = vmatprep.subr.bf16.mxu0 %v5328_v0 }
 0x889   :  { %4845 = vmatpush3.bf16.msra.mxu0 %v5507_v46 }
 0x88a   :  { %4852 = vmatprep.subr.bf16.mxu0 %v5328_v0 }
 0x88c   :  { %4434 = vmatmul.mubr.msk.f32.vlgmr.msra.gmra.mrb[16].mxu0 %vm254_vm2, %v1067_v18 }
 0x88d   :  { %4854 = vmatpush3.bf16.msra.mxu0 %v5612_v49  ;;  %4455 = vmatprep.mubr.msk.f32.mxu0 %vm5329_vm0, %v5330_v1 }
 0x88e   :  { %4855 = vmatprep.subr.bf16.mxu0 %v5328_v0 }
 0x88f   :  { %v1167_v19 = vpop.permute.xlu0 %1166 }
 0x890   :  { %4423 = vmatmul.mubr.msk.f32.vlgmr.msra.gmra.mrb[12].mxu1 %vm254_vm2, %v1167_v19 }
 0x891   :  { %4848 = vmatpush3.bf16.msra.mxu1 %v5621_v58  ;;  %4857 = vmatpush3.bf16.msra.mxu0 %v5631_v2 }
 0x892   :  { %4849 = vmatprep.subr.bf16.mxu1 %v5328_v0  ;;  %4444 = vmatprep.mubr.msk.f32.mxu1 %vm5329_vm0, %v5330_v1 }
 0x893   :  { %4864 = vmatprep.subr.bf16.mxu0 %v5328_v0 }
 0x894   :  { %4456 = vmatmul.mubr.msk.f32.vlgmr.msra.gmra.mrb[18].mxu0 %vm254_vm2, %v1167_v19 }
 0x895   :  { %4851 = vmatpush3.bf16.msra.mxu1 %v5638_v3  ;;  %4866 = vmatpush3.bf16.msra.mxu0 %v5540_v59 }
 0x896   :  { %4858 = vmatprep.subr.bf16.mxu1 %v5328_v0  ;;  %4867 = vmatprep.subr.bf16.mxu0 %v5328_v0 }
 0x897   :  { %v1337_v20 = vpop.permute.xlu1 %1336  ;;  %4477 = vmatprep.mubr.msk.f32.mxu0 %vm5329_vm0, %v5330_v1 }
 0x898   :  { %4445 = vmatmul.mubr.msk.f32.vlgmr.msra.gmra.mrb[14].mxu1 %vm254_vm2, %v1337_v20 }
 0x899   :  { %4860 = vmatpush3.bf16.msra.mxu1 %v5440_v10  ;;  %4466 = vmatprep.mubr.msk.f32.mxu1 %vm5329_vm0, %v5330_v1 }
 0x89a   :  { %4861 = vmatprep.subr.bf16.mxu1 %v5328_v0  ;;  %4869 = vmatpush3.bf16.msra.mxu0 %v5551_v63 }
 0x89b   :  { %4876 = vmatprep.subr.bf16.mxu0 %v5328_v0 }
 0x89d   :  { %4863 = vmatpush3.bf16.msra.mxu1 %v5447_v16 }
 0x89e   :  { %4870 = vmatprep.subr.bf16.mxu1 %v5328_v0 }
 0x957   :  { %v1136_v23 = vpop.f32.mrb[14].mxu0 }
 0x958   :  { %v1140_v24 = vadd.f32 %v1136_v23, %v206_v22  ;;  %v4413_v25 = vpop.f32.mrb[15].mxu0 }
 0x95a   :  { %5082 = vtanh.f32 %v1140_v24  ;;  %v4006_v43 = vmul.f32 -1.442695, %v1140_v24 }
 0x95f   :  { %v1306_v26 = vpop.f32.mrb[16].mxu0 }
 0x960   :  { %v4435_v27 = vpop.f32.mrb[17].mxu0 }
 0x963   :  { %v1236_v28 = vpop.f32.mrb[12].mxu1 }
 0x964   :  { %v5083_v29 = vpop.eup %5082  ;;  %v1307_v30 = vadd.f32 %v1306_v26, %v1236_v28  ;;  %v4424_v31 = vpop.f32.mrb[13].mxu1 }
 0x965   :  { %1150 = vrot.lane.b32.xlu0 %v5083_v29, %s5331_s21 }
 0x966   :  { %v1310_v33 = vadd.f32 %v5576_v8, %v1307_v30 }
 0x967   :  { %v1476_v34 = vpop.f32.mrb[18].mxu0 }
 0x968   :  { %5084 = vtanh.f32 %v1310_v33  ;;  %v4457_v37 = vpop.f32.mrb[19].mxu0  ;;  %v4009_v45 = vmul.f32 -1.442695, %v1310_v33 }
 0x96b   :  { %v1406_v38 = vpop.f32.mrb[14].mxu1 }
 0x96c   :  { %v1477_v39 = vadd.f32 %v1476_v34, %v1406_v38  ;;  %v4446_v51 = vpop.f32.mrb[15].mxu1  ;;  %v211_v38 = vadd.f32 %v5464_v21, %v5528_v54 }
 0x96e   :  { %v1480_v40 = vadd.f32 %v5668_v52, %v1477_v39 }
 0x970   :  { %5086 = vtanh.f32 %v1480_v40  ;;  %v4012_v48 = vmul.f32 -1.442695, %v1480_v40 }
 0x971   :  { %5088 = vpow2.f32 %v4006_v43 }
 0x972   :  { %v5085_v35 = vpop.eup %5084  ;;  %5090 = vpow2.f32 %v4009_v45 }
 0x973   :  { %1320 = vrot.lane.b32.xlu1 %v5085_v35, %s5331_s21 }
 0x97a   :  { %v5087_v42 = vpop.eup %5086 }
 0x97b   :  { %1490 = vrot.lane.b32.xlu0 %v5087_v42, %s5331_s21  ;;  %v5089_v44 = vpop.eup %5088 }
 0x97c   :  { %v1144_v47 = vadd.f32 1.0, %v5089_v44  ;;  %v5091_v50 = vpop.eup %5090 }
 0x97d   :  { %v1314_v61 = vadd.f32 1.0, %v5091_v50 }
 0x97e   :  { %5092 = vrcp.f32 %v1144_v47 }
 0x97f   :  { %5094 = vpow2.f32 %v4012_v48 }
 0x980   :  { %5096 = vrcp.f32 %v1314_v61 }
 0x988   :  { %v5093_v57 = vpop.eup %5092 }
 0x989   :  { %v5095_v6 = vpop.eup %5094  ;;  %v1148_v15 = vmul.f32 %v5093_v57, %v5677_v60 }
 0x98a   :  { %v1484_v7 = vadd.f32 1.0, %v5095_v6  ;;  %v5097_v32 = vpop.eup %5096 }
 0x98b   :  { %v1318_v20 = vmul.f32 %v5097_v32, %v5681_v5 }
 0x98c   :  { %5098 = vrcp.f32 %v1484_v7 }
 0x996   :  { %v5099_v12 = vpop.eup %5098 }
 0x997   :  { %v1488_v24 = vmul.f32 %v5099_v12, %v5685_v9 }
 0x9d7   :  { %v1151_v62 = vpop.permute.xlu0 %1150 }
 0x9d8   :  { %v1153_v4 = vmul.f32 %v5093_v57, %v1151_v62 }
 0x9da   :  { %1155 = vrot.lane.b32.xlu1 %v1153_v4, %s5332_s22 }
 0x9e5   :  { %v1321_v11 = vpop.permute.xlu1 %1320 }
 0x9e6   :  { %v1323_v36 = vmul.f32 %v5097_v32, %v1321_v11 }
 0x9e8   :  { %1325 = vrot.lane.b32.xlu0 %v1323_v36, %s5332_s22 }
 0x9ed   :  { %v1491_v13 = vpop.permute.xlu0 %1490 }
 0x9ee   :  { %v1493_v14 = vmul.f32 %v5099_v12, %v1491_v13 }
 0x9f0   :  { %1495 = vrot.lane.b32.xlu1 %v1493_v14, %s5332_s22 }
 0xa4c   :  { %v1156_v17 = vpop.permute.xlu1 %1155 }
 0xa4d   :  { %v5739_v18 = vadd.f32 %v1156_v17, %v1148_v15 }
 0xa4f   :  { %5100 = vtanh.f32 %v5739_v18 }
 0xa59   :  { %v5101_v19 = vpop.eup %5100 }
 0xa5a   :  { %v1326_v22 = vpop.permute.xlu0 %1325  ;;  %1161 = vrot.lane.b32.xlu0 %v5101_v19, %s5331_s21 }
 0xa5b   :  { %v5744_v23 = vadd.f32 %v1326_v22, %v1318_v20 }
 0xa5d   :  { %5102 = vtanh.f32 %v5744_v23 }
 0xa62   :  { %v1496_v25 = vpop.permute.xlu1 %1495 }
 0xa63   :  { %v5748_v26 = vadd.f32 %v1496_v25, %v1488_v24 }
 0xa65   :  { %5104 = vtanh.f32 %v5748_v26 }
 0xa67   :  { %v5103_v60 = vpop.eup %5102 }
 0xa68   :  { %1331 = vrot.lane.b32.xlu1 %v5103_v60, %s5331_s21 }
 0xa6f   :  { %v5105_v27 = vpop.eup %5104 }
 0xa70   :  { %1501 = vrot.lane.b32.xlu0 %v5105_v27, %s5331_s21 }
 0xacc   :  { %v1162_v5 = vpop.permute.xlu0 %1161 }
 0xacd   :  { %v1164_v28 = vmul.f32 %v5093_v57, %v1162_v5 }
 0xacf   :  { %1506 = vrot.lane.b32.xlu1 %v1164_v28, %s5332_s22 }
 0xada   :  { %v1332_v29 = vpop.permute.xlu1 %1331 }
 0xadb   :  { %v1334_v30 = vmul.f32 %v5097_v32, %v1332_v29 }
 0xadd   :  { %1606 = vrot.lane.b32.xlu0 %v1334_v30, %s5332_s22 }
 0xae2   :  { %v1502_v9 = vpop.permute.xlu0 %1501 }
 0xae3   :  { %v1504_v31 = vmul.f32 %v5099_v12, %v1502_v9 }
 0xae5   :  { %1776 = vrot.lane.b32.xlu1 %v1504_v31, %s5332_s22 }
 0xb41   :  { %v1507_v33 = vpop.permute.xlu1 %1506 }
 0xb42   :  { %4467 = vmatmul.mubr.msk.f32.vlgmr.msra.gmra.mrb[16].mxu1 %vm254_vm2, %v1507_v33 }
 0xb43   :  { %4872 = vmatpush3.bf16.msra.mxu1 %v5491_v41  ;;  %4488 = vmatprep.mubr.msk.f32.mxu1 %vm5329_vm0, %v5330_v1 }
 0xb44   :  { %4873 = vmatprep.subr.bf16.mxu1 %v5328_v0 }
 0xb47   :  { %4875 = vmatpush3.bf16.msra.mxu1 %v5507_v46 }
 0xb48   :  { %4882 = vmatprep.subr.bf16.mxu1 %v5328_v0 }
 0xb4a   :  { %4489 = vmatmul.mubr.msk.f32.vlgmr.msra.gmra.mrb[18].mxu1 %vm254_vm2, %v1507_v33 }
 0xb4b   :  { %4884 = vmatpush3.bf16.msra.mxu1 %v5612_v49  ;;  %4510 = vmatprep.mubr.msk.f32.mxu1 %vm5329_vm0, %v5330_v1 }
 0xb4c   :  { %4885 = vmatprep.subr.bf16.mxu1 %v5328_v0 }
 0xb4f   :  { %4887 = vmatpush3.bf16.msra.mxu1 %v5631_v2  ;;  %v1607_v34 = vpop.permute.xlu0 %1606 }
 0xb50   :  { %4478 = vmatmul.mubr.msk.f32.vlgmr.msra.gmra.mrb[20].mxu0 %vm254_vm2, %v1607_v34  ;;  %4894 = vmatprep.subr.bf16.mxu1 %v5328_v0 }
 0xb51   :  { %4878 = vmatpush3.bf16.msra.mxu0 %v5621_v58  ;;  %4499 = vmatprep.mubr.msk.f32.mxu0 %vm5329_vm0, %v5330_v1 }
 0xb52   :  { %4511 = vmatmul.mubr.msk.f32.vlgmr.msra.gmra.mrb[20].mxu1 %vm254_vm2, %v1607_v34  ;;  %4879 = vmatprep.subr.bf16.mxu0 %v5328_v0 }
 0xb53   :  { %4896 = vmatpush3.bf16.msra.mxu1 %v5540_v59  ;;  %4532 = vmatprep.mubr.msk.f32.mxu1 %vm5329_vm0, %v5330_v1 }
 0xb54   :  { %4897 = vmatprep.subr.bf16.mxu1 %v5328_v0 }
 0xb55   :  { %4881 = vmatpush3.bf16.msra.mxu0 %v5638_v3 }
 0xb56   :  { %4888 = vmatprep.subr.bf16.mxu0 %v5328_v0 }
 0xb57   :  { %v1777_v37 = vpop.permute.xlu1 %1776  ;;  %4899 = vmatpush3.bf16.msra.mxu1 %v5551_v63 }
 0xb58   :  { %4500 = vmatmul.mubr.msk.f32.vlgmr.msra.gmra.mrb[22].mxu0 %vm254_vm2, %v1777_v37  ;;  %4906 = vmatprep.subr.bf16.mxu1 %v5328_v0 }
 0xb59   :  { %4890 = vmatpush3.bf16.msra.mxu0 %v5440_v10  ;;  %4521 = vmatprep.mubr.msk.f32.mxu0 %vm5329_vm0, %v5330_v1 }
 0xb5a   :  { %4891 = vmatprep.subr.bf16.mxu0 %v5328_v0 }
 0xb5d   :  { %4893 = vmatpush3.bf16.msra.mxu0 %v5447_v16 }
 0xb5e   :  { %4900 = vmatprep.subr.bf16.mxu0 %v5328_v0 }
 0xc15   :  { %v1576_v39 = vpop.f32.mrb[16].mxu1 }
 0xc16   :  { %v1580_v51 = vadd.f32 %v1576_v39, %v211_v38  ;;  %v4468_v40 = vpop.f32.mrb[17].mxu1 }
 0xc18   :  { %5106 = vtanh.f32 %v1580_v51  ;;  %v4014_v7 = vmul.f32 -1.442695, %v1580_v51 }
 0xc1d   :  { %v1746_v35 = vpop.f32.mrb[18].mxu1 }
 0xc1e   :  { %v4490_v42 = vpop.f32.mrb[19].mxu1 }
 0xc22   :  { %v5107_v43 = vpop.eup %5106 }
 0xc23   :  { %v1676_v44 = vpop.f32.mrb[20].mxu0  ;;  %1590 = vrot.lane.b32.xlu0 %v5107_v43, %s5331_s21 }
 0xc24   :  { %v1747_v45 = vadd.f32 %v1746_v35, %v1676_v44  ;;  %v4479_v47 = vpop.f32.mrb[21].mxu0 }
 0xc25   :  { %v1916_v48 = vpop.f32.mrb[20].mxu1 }
 0xc26   :  { %v1750_v50 = vadd.f32 %v5576_v8, %v1747_v45  ;;  %v4512_v57 = vpop.f32.mrb[21].mxu1 }
 0xc28   :  { %5108 = vtanh.f32 %v1750_v50  ;;  %v4017_v11 = vmul.f32 -1.442695, %v1750_v50  ;;  %v5854_v50 = vld [vmem:[#allocation7] ss:$0 sm:$0xff] }
 0xc29   :  { %v216_v57 = vadd.f32 %v5854_v50, %v5526_v53 }
 0xc2b   :  { %v1846_v61 = vpop.f32.mrb[22].mxu0 }
 0xc2c   :  { %v1917_v62 = vadd.f32 %v1916_v48, %v1846_v61  ;;  %v4501_v21 = vpop.f32.mrb[23].mxu0 }
 0xc2e   :  { %v1920_v54 = vadd.f32 %v5668_v52, %v1917_v62 }
 0xc30   :  { %5110 = vtanh.f32 %v1920_v54  ;;  %v4020_v12 = vmul.f32 -1.442695, %v1920_v54 }
 0xc31   :  { %5112 = vpow2.f32 %v4014_v7 }
 0xc32   :  { %v5109_v4 = vpop.eup %5108  ;;  %5114 = vpow2.f32 %v4017_v11 }
 0xc33   :  { %1760 = vrot.lane.b32.xlu1 %v5109_v4, %s5331_s21 }
 0xc3a   :  { %v5111_v6 = vpop.eup %5110 }
 0xc3b   :  { %1930 = vrot.lane.b32.xlu0 %v5111_v6, %s5331_s21  ;;  %v5113_v32 = vpop.eup %5112 }
 0xc3c   :  { %v1584_v36 = vadd.f32 1.0, %v5113_v32  ;;  %v5115_v13 = vpop.eup %5114 }
 0xc3d   :  { %v1754_v19 = vadd.f32 1.0, %v5115_v13 }
 0xc3e   :  { %5116 = vrcp.f32 %v1584_v36 }
 0xc3f   :  { %5118 = vpow2.f32 %v4020_v12 }
 0xc40   :  { %5120 = vrcp.f32 %v1754_v19 }
 0xc48   :  { %v5117_v14 = vpop.eup %5116 }
 0xc49   :  { %v5119_v20 = vpop.eup %5118  ;;  %v1588_v29 = vmul.f32 %v5117_v14, %v5739_v18 }
 0xc4a   :  { %v1924_v22 = vadd.f32 1.0, %v5119_v20  ;;  %v5121_v24 = vpop.eup %5120 }
 0xc4b   :  { %v1758_v33 = vmul.f32 %v5121_v24, %v5744_v23 }
 0xc4c   :  { %5122 = vrcp.f32 %v1924_v22 }
 0xc56   :  { %v5123_v27 = vpop.eup %5122 }
 0xc57   :  { %v1928_v38 = vmul.f32 %v5123_v27, %v5748_v26 }
 0xc95   :  { %v1591_v15 = vpop.permute.xlu0 %1590 }
 0xc96   :  { %v1593_v17 = vmul.f32 %v5117_v14, %v1591_v15 }
 0xc98   :  { %1595 = vrot.lane.b32.xlu1 %v1593_v17, %s5332_s22 }
 0xca5   :  { %v1761_v25 = vpop.permute.xlu1 %1760 }
 0xca6   :  { %v1763_v60 = vmul.f32 %v5121_v24, %v1761_v25 }
 0xca8   :  { %1765 = vrot.lane.b32.xlu0 %v1763_v60, %s5332_s22 }
 0xcad   :  { %v1931_v5 = vpop.permute.xlu0 %1930 }
 0xcae   :  { %v1933_v28 = vmul.f32 %v5123_v27, %v1931_v5 }
 0xcb0   :  { %1935 = vrot.lane.b32.xlu1 %v1933_v28, %s5332_s22 }
 0xd0a   :  { %v1596_v30 = vpop.permute.xlu1 %1595 }
 0xd0b   :  { %v5802_v9 = vadd.f32 %v1596_v30, %v1588_v29 }
 0xd0d   :  { %5124 = vtanh.f32 %v5802_v9 }
 0xd17   :  { %v5125_v31 = vpop.eup %5124 }
 0xd18   :  { %1601 = vrot.lane.b32.xlu0 %v5125_v31, %s5331_s21 }
 0xd1a   :  { %v1766_v34 = vpop.permute.xlu0 %1765 }
 0xd1b   :  { %v5807_v37 = vadd.f32 %v1766_v34, %v1758_v33 }
 0xd1d   :  { %5126 = vtanh.f32 %v5807_v37 }
 0xd22   :  { %v1936_v39 = vpop.permute.xlu1 %1935 }
 0xd23   :  { %v5811_v51 = vadd.f32 %v1936_v39, %v1928_v38 }
 0xd25   :  { %5128 = vtanh.f32 %v5811_v51 }
 0xd27   :  { %v5127_v18 = vpop.eup %5126 }
 0xd28   :  { %1771 = vrot.lane.b32.xlu1 %v5127_v18, %s5331_s21 }
 0xd2f   :  { %v5129_v40 = vpop.eup %5128 }
 0xd30   :  { %1941 = vrot.lane.b32.xlu0 %v5129_v40, %s5331_s21 }
 0xd8a   :  { %v1602_v35 = vpop.permute.xlu0 %1601 }
 0xd8b   :  { %v1604_v23 = vmul.f32 %v5117_v14, %v1602_v35 }
 0xd8d   :  { %1946 = vrot.lane.b32.xlu1 %v1604_v23, %s5332_s22 }
 0xd9a   :  { %v1772_v42 = vpop.permute.xlu1 %1771 }
 0xd9b   :  { %v1774_v43 = vmul.f32 %v5121_v24, %v1772_v42 }
 0xd9d   :  { %2046 = vrot.lane.b32.xlu0 %v1774_v43, %s5332_s22 }
 0xda2   :  { %v1942_v26 = vpop.permute.xlu0 %1941 }
 0xda3   :  { %v1944_v44 = vmul.f32 %v5123_v27, %v1942_v26 }
 0xda5   :  { %2216 = vrot.lane.b32.xlu1 %v1944_v44, %s5332_s22 }
 0xdff   :  { %v1947_v45 = vpop.permute.xlu1 %1946 }
 0xe00   :  { %4522 = vmatmul.mubr.msk.f32.vlgmr.msra.gmra.mrb[24].mxu0 %vm254_vm2, %v1947_v45 }
 0xe01   :  { %4902 = vmatpush3.bf16.msra.mxu0 %v5491_v41  ;;  %4543 = vmatprep.mubr.msk.f32.mxu0 %vm5329_vm0, %v5330_v1 }
 0xe02   :  { %4903 = vmatprep.subr.bf16.mxu0 %v5328_v0 }
 0xe05   :  { %4905 = vmatpush3.bf16.msra.mxu0 %v5507_v46 }
 0xe06   :  { %4912 = vmatprep.subr.bf16.mxu0 %v5328_v0 }
 0xe08   :  { %4544 = vmatmul.mubr.msk.f32.vlgmr.msra.gmra.mrb[26].mxu0 %vm254_vm2, %v1947_v45 }
 0xe09   :  { %4914 = vmatpush3.bf16.msra.mxu0 %v5612_v49  ;;  %4565 = vmatprep.mubr.msk.f32.mxu0 %vm5329_vm0, %v5330_v1 }
 0xe0a   :  { %4915 = vmatprep.subr.bf16.mxu0 %v5328_v0 }
 0xe0d   :  { %4917 = vmatpush3.bf16.msra.mxu0 %v5631_v2 }
 0xe0e   :  { %4924 = vmatprep.subr.bf16.mxu0 %v5328_v0 }
 0xe0f   :  { %v2047_v47 = vpop.permute.xlu0 %2046 }
 0xe10   :  { %4533 = vmatmul.mubr.msk.f32.vlgmr.msra.gmra.mrb[22].mxu1 %vm254_vm2, %v2047_v47  ;;  %4566 = vmatmul.mubr.msk.f32.vlgmr.msra.gmra.mrb[28].mxu0 %vm254_vm2, %v2047_v47 }
 0xe11   :  { %4908 = vmatpush3.bf16.msra.mxu1 %v5621_v58  ;;  %4554 = vmatprep.mubr.msk.f32.mxu1 %vm5329_vm0, %v5330_v1 }
 0xe12   :  { %4909 = vmatprep.subr.bf16.mxu1 %v5328_v0  ;;  %4926 = vmatpush3.bf16.msra.mxu0 %v5540_v59 }
 0xe13   :  { %4927 = vmatprep.subr.bf16.mxu0 %v5328_v0  ;;  %4587 = vmatprep.mubr.msk.f32.mxu0 %vm5329_vm0, %v5330_v1 }
 0xe15   :  { %4911 = vmatpush3.bf16.msra.mxu1 %v5638_v3 }
 0xe16   :  { %4918 = vmatprep.subr.bf16.mxu1 %v5328_v0  ;;  %4929 = vmatpush3.bf16.msra.mxu0 %v5551_v63 }
 0xe17   :  { %v2217_v48 = vpop.permute.xlu1 %2216  ;;  %4936 = vmatprep.subr.bf16.mxu0 %v5328_v0 }
 0xe18   :  { %4555 = vmatmul.mubr.msk.f32.vlgmr.msra.gmra.mrb[24].mxu1 %vm254_vm2, %v2217_v48 }
 0xe19   :  { %4920 = vmatpush3.bf16.msra.mxu1 %v5440_v10  ;;  %4576 = vmatprep.mubr.msk.f32.mxu1 %vm5329_vm0, %v5330_v1 }
 0xe1a   :  { %4921 = vmatprep.subr.bf16.mxu1 %v5328_v0 }
 0xe1d   :  { %4923 = vmatpush3.bf16.msra.mxu1 %v5447_v16 }
 0xe1e   :  { %4930 = vmatprep.subr.bf16.mxu1 %v5328_v0 }
 0xed3   :  { %v2016_v61 = vpop.f32.mrb[24].mxu0 }
 0xed4   :  { %v2020_v62 = vadd.f32 %v2016_v61, %v216_v57  ;;  %v4523_v21 = vpop.f32.mrb[25].mxu0 }
 0xed6   :  { %5130 = vtanh.f32 %v2020_v62  ;;  %v4022_v22 = vmul.f32 -1.442695, %v2020_v62 }
 0xedb   :  { %v2186_v54 = vpop.f32.mrb[26].mxu0 }
 0xedc   :  { %v4545_v4 = vpop.f32.mrb[27].mxu0 }
 0xee0   :  { %v5131_v6 = vpop.eup %5130 }
 0xee1   :  { %2030 = vrot.lane.b32.xlu0 %v5131_v6, %s5331_s21 }
 0xee3   :  { %v2116_v7 = vpop.f32.mrb[22].mxu1  ;;  %v2356_v32 = vpop.f32.mrb[28].mxu0 }
 0xee4   :  { %v2187_v11 = vadd.f32 %v2186_v54, %v2116_v7  ;;  %v4534_v36 = vpop.f32.mrb[23].mxu1  ;;  %v4567_v12 = vpop.f32.mrb[29].mxu0 }
 0xee5   :  { %v221_v36 = vadd.f32 %v5854_v50, %v5532_v56 }
 0xee6   :  { %v2190_v13 = vadd.f32 %v5576_v8, %v2187_v11 }
 0xee8   :  { %5132 = vtanh.f32 %v2190_v13  ;;  %v4025_v60 = vmul.f32 -1.442695, %v2190_v13 }
 0xeeb   :  { %v2286_v14 = vpop.f32.mrb[24].mxu1 }
 0xeec   :  { %v2357_v15 = vadd.f32 %v2356_v32, %v2286_v14  ;;  %v4556_v53 = vpop.f32.mrb[25].mxu1 }
 0xeee   :  { %v2360_v17 = vadd.f32 %v5668_v52, %v2357_v15 }
 0xef0   :  { %5134 = vtanh.f32 %v2360_v17  ;;  %v4028_v8 = vmul.f32 -1.442695, %v2360_v17 }
 0xef1   :  { %5136 = vpow2.f32 %v4022_v22 }
 0xef2   :  { %v5133_v19 = vpop.eup %5132 }
 0xef3   :  { %2200 = vrot.lane.b32.xlu1 %v5133_v19, %s5331_s21 }
 0xefa   :  { %v5135_v20 = vpop.eup %5134 }
 0xefb   :  { %2370 = vrot.lane.b32.xlu0 %v5135_v20, %s5331_s21  ;;  %v5137_v24 = vpop.eup %5136 }
 0xefc   :  { %v2024_v25 = vadd.f32 1.0, %v5137_v24 }
 0xefe   :  { %5138 = vrcp.f32 %v2024_v25 }
 0xeff   :  { %5140 = vpow2.f32 %v4025_v60 }
 0xf00   :  { %5142 = vpow2.f32 %v4028_v8 }
 0xf08   :  { %v5139_v27 = vpop.eup %5138 }
 0xf09   :  { %v5141_v28 = vpop.eup %5140  ;;  %v2028_v23 = vmul.f32 %v5139_v27, %v5802_v9 }
 0xf0a   :  { %v2194_v30 = vadd.f32 1.0, %v5141_v28  ;;  %v5143_v31 = vpop.eup %5142 }
 0xf0b   :  { %v2364_v33 = vadd.f32 1.0, %v5143_v31 }
 0xf0c   :  { %5144 = vrcp.f32 %v2194_v30 }
 0xf0d   :  { %5146 = vrcp.f32 %v2364_v33 }
 0xf16   :  { %v5145_v34 = vpop.eup %5144 }
 0xf17   :  { %v5147_v18 = vpop.eup %5146  ;;  %v2198_v44 = vmul.f32 %v5145_v34, %v5807_v37 }
 0xf18   :  { %v2368_v48 = vmul.f32 %v5147_v18, %v5811_v51 }
 0xf53   :  { %v2031_v5 = vpop.permute.xlu0 %2030 }
 0xf54   :  { %v2033_v29 = vmul.f32 %v5139_v27, %v2031_v5 }
 0xf56   :  { %2035 = vrot.lane.b32.xlu1 %v2033_v29, %s5332_s22 }
 0xf65   :  { %v2201_v38 = vpop.permute.xlu1 %2200 }
 0xf66   :  { %v2203_v39 = vmul.f32 %v5145_v34, %v2201_v38 }
 0xf68   :  { %2205 = vrot.lane.b32.xlu0 %v2203_v39, %s5332_s22 }
 0xf6d   :  { %v2371_v40 = vpop.permute.xlu0 %2370 }
 0xf6e   :  { %v2373_v35 = vmul.f32 %v5147_v18, %v2371_v40 }
 0xf70   :  { %2375 = vrot.lane.b32.xlu1 %v2373_v35, %s5332_s22 }
 0xfc8   :  { %v2036_v42 = vpop.permute.xlu1 %2035 }
 0xfc9   :  { %v5867_v43 = vadd.f32 %v2036_v42, %v2028_v23 }
 0xfcb   :  { %5148 = vtanh.f32 %v5867_v43 }
 0xfd5   :  { %v5149_v26 = vpop.eup %5148 }
 0xfd6   :  { %2041 = vrot.lane.b32.xlu0 %v5149_v26, %s5331_s21 }
 0xfda   :  { %v2206_v45 = vpop.permute.xlu0 %2205 }
 0xfdb   :  { %v5872_v47 = vadd.f32 %v2206_v45, %v2198_v44 }
 0xfdd   :  { %5150 = vtanh.f32 %v5872_v47 }
 0xfe2   :  { %v2376_v57 = vpop.permute.xlu1 %2375 }
 0xfe3   :  { %v5876_v61 = vadd.f32 %v2376_v57, %v2368_v48 }
 0xfe5   :  { %5152 = vtanh.f32 %v5876_v61 }
 0xfe7   :  { %v5151_v9 = vpop.eup %5150 }
 0xfe8   :  { %2211 = vrot.lane.b32.xlu1 %v5151_v9, %s5331_s21 }
 0xfef   :  { %v5153_v62 = vpop.eup %5152 }
 0xff0   :  { %2381 = vrot.lane.b32.xlu0 %v5153_v62, %s5331_s21 }
0x1048   :  { %v2042_v21 = vpop.permute.xlu0 %2041 }
0x1049   :  { %v2044_v37 = vmul.f32 %v5139_v27, %v2042_v21 }
0x104b   :  { %2386 = vrot.lane.b32.xlu1 %v2044_v37, %s5332_s22 }
0x105a   :  { %v2212_v54 = vpop.permute.xlu1 %2211 }
0x105b   :  { %v2214_v4 = vmul.f32 %v5145_v34, %v2212_v54 }
0x105d   :  { %2486 = vrot.lane.b32.xlu0 %v2214_v4, %s5332_s22 }
0x1062   :  { %v2382_v51 = vpop.permute.xlu0 %2381 }
0x1063   :  { %v2384_v6 = vmul.f32 %v5147_v18, %v2382_v51 }
0x1065   :  { %2656 = vrot.lane.b32.xlu1 %v2384_v6, %s5332_s22 }
0x10bd   :  { %v2387_v7 = vpop.permute.xlu1 %2386 }
0x10be   :  { %4577 = vmatmul.mubr.msk.f32.vlgmr.msra.gmra.mrb[26].mxu1 %vm254_vm2, %v2387_v7 }
0x10bf   :  { %4932 = vmatpush3.bf16.msra.mxu1 %v5491_v41  ;;  %4598 = vmatprep.mubr.msk.f32.mxu1 %vm5329_vm0, %v5330_v1 }
0x10c0   :  { %4933 = vmatprep.subr.bf16.mxu1 %v5328_v0 }
0x10c3   :  { %4935 = vmatpush3.bf16.msra.mxu1 %v5507_v46 }
0x10c4   :  { %4942 = vmatprep.subr.bf16.mxu1 %v5328_v0 }
0x10c6   :  { %4599 = vmatmul.mubr.msk.f32.vlgmr.msra.gmra.mrb[28].mxu1 %vm254_vm2, %v2387_v7 }
0x10c7   :  { %4944 = vmatpush3.bf16.msra.mxu1 %v5612_v49  ;;  %4620 = vmatprep.mubr.msk.f32.mxu1 %vm5329_vm0, %v5330_v1 }
0x10c8   :  { %4945 = vmatprep.subr.bf16.mxu1 %v5328_v0 }
0x10cb   :  { %4947 = vmatpush3.bf16.msra.mxu1 %v5631_v2 }
0x10cc   :  { %4954 = vmatprep.subr.bf16.mxu1 %v5328_v0 }
0x10cf   :  { %v2487_v32 = vpop.permute.xlu0 %2486 }
0x10d0   :  { %4588 = vmatmul.mubr.msk.f32.vlgmr.msra.gmra.mrb[30].mxu0 %vm254_vm2, %v2487_v32  ;;  %4621 = vmatmul.mubr.msk.f32.vlgmr.msra.gmra.mrb[30].mxu1 %vm254_vm2, %v2487_v32 }
0x10d1   :  { %4938 = vmatpush3.bf16.msra.mxu0 %v5621_v58  ;;  %4609 = vmatprep.mubr.msk.f32.mxu0 %vm5329_vm0, %v5330_v1 }
0x10d2   :  { %4939 = vmatprep.subr.bf16.mxu0 %v5328_v0  ;;  %4956 = vmatpush3.bf16.msra.mxu1 %v5540_v59 }
0x10d3   :  { %4957 = vmatprep.subr.bf16.mxu1 %v5328_v0  ;;  %4642 = vmatprep.mubr.msk.f32.mxu1 %vm5329_vm0, %v5330_v1 }
0x10d5   :  { %4941 = vmatpush3.bf16.msra.mxu0 %v5638_v3 }
0x10d6   :  { %4948 = vmatprep.subr.bf16.mxu0 %v5328_v0  ;;  %4959 = vmatpush3.bf16.msra.mxu1 %v5551_v63 }
0x10d7   :  { %v2657_v11 = vpop.permute.xlu1 %2656  ;;  %4966 = vmatprep.subr.bf16.mxu1 %v5328_v0 }
0x10d8   :  { %4610 = vmatmul.mubr.msk.f32.vlgmr.msra.gmra.mrb[32].mxu0 %vm254_vm2, %v2657_v11 }
0x10d9   :  { %4950 = vmatpush3.bf16.msra.mxu0 %v5440_v10  ;;  %4631 = vmatprep.mubr.msk.f32.mxu0 %vm5329_vm0, %v5330_v1 }
0x10da   :  { %4951 = vmatprep.subr.bf16.mxu0 %v5328_v0 }
0x10dd   :  { %4953 = vmatpush3.bf16.msra.mxu0 %v5447_v16  ;;  %v5925_v16 = vld [vmem:[%s6112_s6] ss:$0 sm:$0xff] }
0x10de   :  { %4960 = vmatprep.subr.bf16.mxu0 %v5328_v0 }
0x1191   :  { %v2456_v12 = vpop.f32.mrb[26].mxu1 }
0x1192   :  { %v2460_v13 = vadd.f32 %v2456_v12, %v221_v36  ;;  %v4578_v14 = vpop.f32.mrb[27].mxu1 }
0x1194   :  { %5154 = vtanh.f32 %v2460_v13  ;;  %v4030_v29 = vmul.f32 -1.442695, %v2460_v13 }
0x1199   :  { %v2626_v15 = vpop.f32.mrb[28].mxu1 }
0x119a   :  { %v4600_v53 = vpop.f32.mrb[29].mxu1 }
0x119e   :  { %v5155_v17 = vpop.eup %5154 }
0x119f   :  { %2470 = vrot.lane.b32.xlu0 %v5155_v17, %s5331_s21 }
0x11a3   :  { %v2556_v10 = vpop.f32.mrb[30].mxu0  ;;  %v2796_v19 = vpop.f32.mrb[30].mxu1 }
0x11a4   :  { %v2627_v20 = vadd.f32 %v2626_v15, %v2556_v10  ;;  %v4589_v22 = vpop.f32.mrb[31].mxu0  ;;  %v4622_v24 = vpop.f32.mrb[31].mxu1 }
0x11a6   :  { %v2630_v56 = vadd.f32 %v5925_v16, %v2627_v20 }
0x11a8   :  { %5156 = vtanh.f32 %v2630_v56  ;;  %v4033_v33 = vmul.f32 -1.442695, %v2630_v56 }
0x11ab   :  { %v2726_v25 = vpop.f32.mrb[32].mxu0 }
0x11ac   :  { %v2797_v60 = vadd.f32 %v2796_v19, %v2726_v25  ;;  %v4611_v8 = vpop.f32.mrb[33].mxu0 }
0x11ae   :  { %v2800_v27 = vadd.f32 %v5668_v52, %v2797_v60 }
0x11b0   :  { %5158 = vtanh.f32 %v2800_v27  ;;  %v4036_v34 = vmul.f32 -1.442695, %v2800_v27 }
0x11b1   :  { %5160 = vpow2.f32 %v4030_v29 }
0x11b2   :  { %v5157_v5 = vpop.eup %5156 }
0x11b3   :  { %2640 = vrot.lane.b32.xlu1 %v5157_v5, %s5331_s21 }
0x11ba   :  { %v5159_v28 = vpop.eup %5158 }
0x11bb   :  { %2810 = vrot.lane.b32.xlu0 %v5159_v28, %s5331_s21  ;;  %v5161_v30 = vpop.eup %5160 }
0x11bc   :  { %v2464_v31 = vadd.f32 1.0, %v5161_v30 }
0x11be   :  { %5162 = vrcp.f32 %v2464_v31 }
0x11bf   :  { %5164 = vpow2.f32 %v4033_v33 }
0x11c0   :  { %5166 = vpow2.f32 %v4036_v34 }
0x11c8   :  { %v5163_v38 = vpop.eup %5162 }
0x11c9   :  { %v5165_v52 = vpop.eup %5164  ;;  %v2468_v9 = vmul.f32 %v5163_v38, %v5867_v43 }
0x11ca   :  { %v2634_v40 = vadd.f32 1.0, %v5165_v52  ;;  %v5167_v35 = vpop.eup %5166 }
0x11cb   :  { %v2804_v23 = vadd.f32 1.0, %v5167_v35 }
0x11cc   :  { %5168 = vrcp.f32 %v2634_v40 }
0x11cd   :  { %5170 = vrcp.f32 %v2804_v23 }
0x11d6   :  { %v5169_v42 = vpop.eup %5168 }
0x11d7   :  { %v5171_v45 = vpop.eup %5170  ;;  %v2638_v54 = vmul.f32 %v5169_v42, %v5872_v47 }
0x11d8   :  { %v2808_v6 = vmul.f32 %v5171_v45, %v5876_v61 }
0x1211   :  { %v2471_v39 = vpop.permute.xlu0 %2470 }
0x1212   :  { %v2473_v18 = vmul.f32 %v5163_v38, %v2471_v39 }
0x1214   :  { %2475 = vrot.lane.b32.xlu1 %v2473_v18, %s5332_s22 }
0x1225   :  { %v2641_v26 = vpop.permute.xlu1 %2640 }
0x1226   :  { %v2643_v44 = vmul.f32 %v5169_v42, %v2641_v26 }
0x1228   :  { %2645 = vrot.lane.b32.xlu0 %v2643_v44, %s5332_s22 }
0x122d   :  { %v2811_v48 = vpop.permute.xlu0 %2810 }
0x122e   :  { %v2813_v57 = vmul.f32 %v5171_v45, %v2811_v48 }
0x1230   :  { %2815 = vrot.lane.b32.xlu1 %v2813_v57, %s5332_s22 }
0x1286   :  { %v2476_v62 = vpop.permute.xlu1 %2475 }
0x1287   :  { %v5935_v21 = vadd.f32 %v2476_v62, %v2468_v9 }
0x1289   :  { %5172 = vtanh.f32 %v5935_v21 }
0x1293   :  { %v5173_v37 = vpop.eup %5172 }
0x1294   :  { %2481 = vrot.lane.b32.xlu0 %v5173_v37, %s5331_s21 }
0x129a   :  { %v2646_v4 = vpop.permute.xlu0 %2645 }
0x129b   :  { %v5940_v51 = vadd.f32 %v2646_v4, %v2638_v54 }
0x129d   :  { %5174 = vtanh.f32 %v5940_v51 }
0x12a2   :  { %v2816_v7 = vpop.permute.xlu1 %2815 }
0x12a3   :  { %v5944_v32 = vadd.f32 %v2816_v7, %v2808_v6 }
0x12a5   :  { %5176 = vtanh.f32 %v5944_v32 }
0x12a7   :  { %v5175_v43 = vpop.eup %5174 }
0x12a8   :  { %2651 = vrot.lane.b32.xlu1 %v5175_v43, %s5331_s21 }
0x12af   :  { %v5177_v11 = vpop.eup %5176 }
0x12b0   :  { %2821 = vrot.lane.b32.xlu0 %v5177_v11, %s5331_s21 }
0x1306   :  { %v2482_v36 = vpop.permute.xlu0 %2481 }
0x1307   :  { %v2484_v47 = vmul.f32 %v5163_v38, %v2482_v36 }
0x1309   :  { %2826 = vrot.lane.b32.xlu1 %v2484_v47, %s5332_s22 }
0x131a   :  { %v2652_v12 = vpop.permute.xlu1 %2651 }
0x131b   :  { %v2654_v13 = vmul.f32 %v5169_v42, %v2652_v12 }
0x131d   :  { %2926 = vrot.lane.b32.xlu0 %v2654_v13, %s5332_s22 }
0x1322   :  { %v2822_v61 = vpop.permute.xlu0 %2821 }
0x1323   :  { %v2824_v14 = vmul.f32 %v5171_v45, %v2822_v61 }
0x1325   :  { %3096 = vrot.lane.b32.xlu1 %v2824_v14, %s5332_s22 }
0x137b   :  { %v2827_v15 = vpop.permute.xlu1 %2826 }
0x137c   :  { %4632 = vmatmul.mubr.msk.f32.vlgmr.msra.gmra.mrb[34].mxu0 %vm254_vm2, %v2827_v15 }
0x137d   :  { %4962 = vmatpush3.bf16.msra.mxu0 %v5491_v41  ;;  %4653 = vmatprep.mubr.msk.f32.mxu0 %vm5329_vm0, %v5330_v1 }
0x137e   :  { %4963 = vmatprep.subr.bf16.mxu0 %v5328_v0 }
0x1381   :  { %4965 = vmatpush3.bf16.msra.mxu0 %v5507_v46 }
0x1382   :  { %4972 = vmatprep.subr.bf16.mxu0 %v5328_v0 }
0x1384   :  { %4654 = vmatmul.mubr.msk.f32.vlgmr.msra.gmra.mrb[36].mxu0 %vm254_vm2, %v2827_v15 }
0x1385   :  { %4974 = vmatpush3.bf16.msra.mxu0 %v5612_v49  ;;  %4675 = vmatprep.mubr.msk.f32.mxu0 %vm5329_vm0, %v5330_v1 }
0x1386   :  { %4975 = vmatprep.subr.bf16.mxu0 %v5328_v0 }
0x1389   :  { %4977 = vmatpush3.bf16.msra.mxu0 %v5631_v2 }
0x138a   :  { %4984 = vmatprep.subr.bf16.mxu0 %v5328_v0 }
0x138f   :  { %v2927_v53 = vpop.permute.xlu0 %2926 }
0x1390   :  { %4643 = vmatmul.mubr.msk.f32.vlgmr.msra.gmra.mrb[32].mxu1 %vm254_vm2, %v2927_v53  ;;  %4676 = vmatmul.mubr.msk.f32.vlgmr.msra.gmra.mrb[38].mxu0 %vm254_vm2, %v2927_v53 }
0x1391   :  { %4968 = vmatpush3.bf16.msra.mxu1 %v5621_v58  ;;  %4664 = vmatprep.mubr.msk.f32.mxu1 %vm5329_vm0, %v5330_v1 }
0x1392   :  { %4969 = vmatprep.subr.bf16.mxu1 %v5328_v0  ;;  %4986 = vmatpush3.bf16.msra.mxu0 %v5491_v41  ;;  %v226_v41 = vadd.f32 %v5854_v50, %v5530_v55  ;;  %v5994_v50 = vld [vmem:[%s6112_s6 + $0x1] ss:$0 sm:$0xff] }
0x1393   :  { %4987 = vmatprep.subr.bf16.mxu0 %v5328_v0  ;;  %4697 = vmatprep.mubr.msk.f32.mxu0 %vm5329_vm0, %v5330_v1 }
0x1395   :  { %4971 = vmatpush3.bf16.msra.mxu1 %v5638_v3 }
0x1396   :  { %4989 = vmatpush3.bf16.msra.mxu0 %v5507_v46  ;;  %4978 = vmatprep.subr.bf16.mxu1 %v5328_v0 }
0x1397   :  { %v3097_v17 = vpop.permute.xlu1 %3096  ;;  %4996 = vmatprep.subr.bf16.mxu0 %v5328_v0 }
0x1398   :  { %4665 = vmatmul.mubr.msk.f32.vlgmr.msra.gmra.mrb[34].mxu1 %vm254_vm2, %v3097_v17 }
0x1399   :  { %4980 = vmatpush3.bf16.msra.mxu1 %v5540_v59  ;;  %4686 = vmatprep.mubr.msk.f32.mxu1 %vm5329_vm0, %v5330_v1 }
0x139a   :  { %4981 = vmatprep.subr.bf16.mxu1 %v5328_v0 }
0x139d   :  { %4983 = vmatpush3.bf16.msra.mxu1 %v5551_v63 }
0x139e   :  { %4990 = vmatprep.subr.bf16.mxu1 %v5328_v0 }
0x144f   :  { %v2896_v46 = vpop.f32.mrb[34].mxu0 }
0x1450   :  { %v2900_v10 = vadd.f32 %v2896_v46, %v226_v41  ;;  %v4633_v19 = vpop.f32.mrb[35].mxu0 }
0x1452   :  { %5178 = vtanh.f32 %v2900_v10  ;;  %v4038_v31 = vmul.f32 -1.442695, %v2900_v10 }
0x1457   :  { %v3066_v20 = vpop.f32.mrb[36].mxu0 }
0x1458   :  { %v4655_v22 = vpop.f32.mrb[37].mxu0 }
0x145c   :  { %v5179_v24 = vpop.eup %5178 }
0x145d   :  { %2910 = vrot.lane.b32.xlu0 %v5179_v24, %s5331_s21 }
0x1463   :  { %v2996_v59 = vpop.f32.mrb[32].mxu1  ;;  %v3236_v56 = vpop.f32.mrb[38].mxu0 }
0x1464   :  { %v3067_v25 = vadd.f32 %v3066_v20, %v2996_v59  ;;  %v4644_v60 = vpop.f32.mrb[33].mxu1  ;;  %v4677_v8 = vpop.f32.mrb[39].mxu0 }
0x1466   :  { %v3070_v63 = vadd.f32 %v5925_v16, %v3067_v25 }
0x1468   :  { %5180 = vtanh.f32 %v3070_v63  ;;  %v4041_v38 = vmul.f32 -1.442695, %v3070_v63 }
0x146b   :  { %v3166_v27 = vpop.f32.mrb[34].mxu1 }
0x146c   :  { %v3237_v5 = vadd.f32 %v3236_v56, %v3166_v27  ;;  %v4666_v55 = vpop.f32.mrb[35].mxu1 }
0x146e   :  { %v3240_v28 = vadd.f32 %v5994_v50, %v3237_v5 }
0x1470   :  { %5182 = vtanh.f32 %v3240_v28  ;;  %v4044_v39 = vmul.f32 -1.442695, %v3240_v28 }
0x1471   :  { %5184 = vpow2.f32 %v4038_v31 }
0x1472   :  { %v5181_v29 = vpop.eup %5180 }
0x1473   :  { %3080 = vrot.lane.b32.xlu1 %v5181_v29, %s5331_s21 }
0x147a   :  { %v5183_v30 = vpop.eup %5182 }
0x147b   :  { %3250 = vrot.lane.b32.xlu0 %v5183_v30, %s5331_s21  ;;  %v5185_v33 = vpop.eup %5184 }
0x147c   :  { %v2904_v34 = vadd.f32 1.0, %v5185_v33 }
0x147e   :  { %5186 = vrcp.f32 %v2904_v34 }
0x147f   :  { %5188 = vpow2.f32 %v4041_v38 }
0x1480   :  { %5190 = vpow2.f32 %v4044_v39 }
0x1488   :  { %v5187_v18 = vpop.eup %5186 }
0x1489   :  { %v5189_v35 = vpop.eup %5188  ;;  %v2908_v37 = vmul.f32 %v5187_v18, %v5935_v21 }
0x148a   :  { %v3074_v23 = vadd.f32 1.0, %v5189_v35  ;;  %v5191_v42 = vpop.eup %5190 }
0x148b   :  { %v3244_v26 = vadd.f32 1.0, %v5191_v42 }
0x148c   :  { %5192 = vrcp.f32 %v3074_v23 }
0x148d   :  { %5194 = vrcp.f32 %v3244_v26 }
0x1496   :  { %v5193_v44 = vpop.eup %5192 }
0x1497   :  { %v5195_v57 = vpop.eup %5194  ;;  %v3078_v7 = vmul.f32 %v5193_v44, %v5940_v51 }
0x1498   :  { %v3248_v36 = vmul.f32 %v5195_v57, %v5944_v32 }
0x14cf   :  { %v2911_v52 = vpop.permute.xlu0 %2910 }
0x14d0   :  { %v2913_v40 = vmul.f32 %v5187_v18, %v2911_v52 }
0x14d2   :  { %2915 = vrot.lane.b32.xlu1 %v2913_v40, %s5332_s22 }
0x14e5   :  { %v3081_v45 = vpop.permute.xlu1 %3080 }
0x14e6   :  { %v3083_v48 = vmul.f32 %v5193_v44, %v3081_v45 }
0x14e8   :  { %3085 = vrot.lane.b32.xlu0 %v3083_v48, %s5332_s22 }
0x14ed   :  { %v3251_v9 = vpop.permute.xlu0 %3250 }
0x14ee   :  { %v3253_v62 = vmul.f32 %v5195_v57, %v3251_v9 }
0x14f0   :  { %3255 = vrot.lane.b32.xlu1 %v3253_v62, %s5332_s22 }
0x1544   :  { %v2916_v54 = vpop.permute.xlu1 %2915 }
0x1545   :  { %v2918_v4 = vadd.f32 %v2916_v54, %v2908_v37 }
0x1547   :  { %5196 = vtanh.f32 %v2918_v4 }
0x1551   :  { %v5197_v6 = vpop.eup %5196 }
0x1552   :  { %2921 = vrot.lane.b32.xlu0 %v5197_v6, %s5331_s21 }
0x155a   :  { %v3086_v43 = vpop.permute.xlu0 %3085 }
0x155b   :  { %v6005_v11 = vadd.f32 %v3086_v43, %v3078_v7 }
0x155d   :  { %5198 = vtanh.f32 %v6005_v11 }
0x1562   :  { %v3256_v47 = vpop.permute.xlu1 %3255 }
0x1563   :  { %v6009_v12 = vadd.f32 %v3256_v47, %v3248_v36 }
0x1565   :  { %5200 = vtanh.f32 %v6009_v12 }
0x1567   :  { %v5199_v21 = vpop.eup %5198 }
0x1568   :  { %3091 = vrot.lane.b32.xlu1 %v5199_v21, %s5331_s21 }
0x156f   :  { %v5201_v13 = vpop.eup %5200 }
0x1570   :  { %3261 = vrot.lane.b32.xlu0 %v5201_v13, %s5331_s21 }
0x15c4   :  { %v2922_v61 = vpop.permute.xlu0 %2921 }
0x15c5   :  { %v2924_v51 = vmul.f32 %v5187_v18, %v2922_v61 }
0x15c7   :  { %3341 = vrot.lane.b32.xlu0 %v2924_v51, %s5332_s22 }
0x15da   :  { %v3092_v14 = vpop.permute.xlu1 %3091 }
0x15db   :  { %v3094_v15 = vmul.f32 %v5193_v44, %v3092_v14 }
0x15dd   :  { %3266 = vrot.lane.b32.xlu1 %v3094_v15, %s5332_s22  ;;  %v3786_v15 = vld [vmem:[%s6113_s7 + $0x8] sm:$0xff] }
0x15e2   :  { %v3262_v32 = vpop.permute.xlu0 %3261 }
0x15e3   :  { %v3264_v53 = vmul.f32 %v5195_v57, %v3262_v32  ;;  %v3787_v32 = vld [vmem:[%s6113_s7 + $0x10] sm:$0xff] }
0x15e5   :  { %3441 = vrot.lane.b32.xlu1 %v3264_v53, %s5332_s22 }
0x1639   :  { %v3342_v17 = vpop.permute.xlu0 %3341 }
0x163a   :  { %4698 = vmatmul.mubr.msk.f32.vlgmr.msra.gmra.mrb[40].mxu0 %vm254_vm2, %v3342_v17  ;;  %v3788_v17 = vld [vmem:[%s6113_s7 + $0x18] sm:$0xff] }
0x163b   :  { %4998 = vmatpush3.bf16.msra.mxu0 %v5612_v49  ;;  %4719 = vmatprep.mubr.msk.f32.mxu0 %vm5329_vm0, %v5330_v1 }
0x163c   :  { %4999 = vmatprep.subr.bf16.mxu0 %v5328_v0 }
0x163f   :  { %5001 = vmatpush3.bf16.msra.mxu0 %v5631_v2 }
0x1640   :  { %5008 = vmatprep.subr.bf16.mxu0 %v5328_v0 }
0x164f   :  { %v3267_v41 = vpop.permute.xlu1 %3266 }
0x1650   :  { %4687 = vmatmul.mubr.msk.f32.vlgmr.msra.gmra.mrb[36].mxu1 %vm254_vm2, %v3267_v41  ;;  %4720 = vmatmul.mubr.msk.f32.vlgmr.msra.gmra.mrb[42].mxu0 %vm254_vm2, %v3267_v41  ;;  %v5018_v41 = vpack.c.bf16 %v3788_v17, %v3787_v32 }
0x1651   :  { %4992 = vmatpush3.bf16.msra.mxu1 %v5621_v58  ;;  %4708 = vmatprep.mubr.msk.f32.mxu1 %vm5329_vm0, %v5330_v1 }
0x1652   :  { %4993 = vmatprep.subr.bf16.mxu1 %v5328_v0  ;;  %5010 = vmatpush3.bf16.msra.mxu0 %v5612_v49 }
0x1653   :  { %5011 = vmatprep.subr.bf16.mxu0 %v5328_v0  ;;  %4741 = vmatprep.mubr.msk.f32.mxu0 %vm5329_vm0, %v5330_v1 }
0x1655   :  { %4995 = vmatpush3.bf16.msra.mxu1 %v5638_v3 }
0x1656   :  { %5013 = vmatpush3.bf16.msra.mxu0 %v5631_v2  ;;  %5002 = vmatprep.subr.bf16.mxu1 %v5328_v0 }
0x1657   :  { %v3442_v46 = vpop.permute.xlu1 %3441  ;;  %5020 = vmatprep.subr.bf16.mxu0 %v5328_v0 }
0x1658   :  { %4709 = vmatmul.mubr.msk.f32.vlgmr.msra.gmra.mrb[38].mxu1 %vm254_vm2, %v3442_v46 }
0x1659   :  { %5004 = vmatpush3.bf16.msra.mxu1 %v5621_v58  ;;  %4730 = vmatprep.mubr.msk.f32.mxu1 %vm5329_vm0, %v5330_v1 }
0x165a   :  { %5005 = vmatprep.subr.bf16.mxu1 %v5328_v0 }
0x165d   :  { %5007 = vmatpush3.bf16.msra.mxu1 %v5638_v3 }
0x165e   :  { %5014 = vmatprep.subr.bf16.mxu1 %v5328_v0 }
0x170d   :  { %v3411_v49 = vpop.f32.mrb[40].mxu0 }
0x170e   :  { %v4699_v2 = vpop.f32.mrb[41].mxu0 }
0x1723   :  { %v3336_v10 = vpop.f32.mrb[36].mxu1  ;;  %v3581_v19 = vpop.f32.mrb[42].mxu0 }
0x1724   :  { %v3412_v20 = vadd.f32 %v3411_v49, %v3336_v10  ;;  %v4688_v22 = vpop.f32.mrb[37].mxu1  ;;  %v4721_v24 = vpop.f32.mrb[43].mxu0 }
0x1725   :  { %v4054_v22 = vld [vmem:[%s6114_s8] ss:$0 sm:$0xff] }
0x1726   :  { %v3415_v59 = vadd.f32 %v5925_v16, %v3412_v20  ;;  %v3873_v20 = vld [vmem:[%s6115_s9 + $0x8] sm:$0xff] }
0x1728   :  { %5202 = vtanh.f32 %v3415_v59  ;;  %v4047_v63 = vmul.f32 -1.442695, %v3415_v59 }
0x172b   :  { %v3511_v58 = vpop.f32.mrb[38].mxu1 }
0x172c   :  { %v3582_v56 = vadd.f32 %v3581_v19, %v3511_v58  ;;  %v4710_v25 = vpop.f32.mrb[39].mxu1  ;;  %v3872_v19 = vld [vmem:[%s6115_s9] sm:$0xff]  ;;  %s5295_s9 = scalar_lea.vmem %s3964_s23, 128 }
0x172d   :  { %v4056_v25 = vld [vmem:[%s6116_s10] ss:$0 sm:$0xff]  ;;  %p5296_p10 = scmp.ne.s32.totalorder %s3964_s23, %s5295_s9  ;;  %p5301_p12 = scmp.lt.s32.totalorder %s5295_s9, %s5295_s9 }
0x172e   :  { %v3585_v60 = vadd.f32 %v5994_v50, %v3582_v56 }
0x172f   :  { %p5302_p13 = por %p5301_p12, %p5300_p11 }
0x1730   :  { %5204 = vtanh.f32 %v3585_v60  ;;  %v4050_v27 = vmul.f32 -1.442695, %v3585_v60 }
0x1731   :  { %5206 = vpow2.f32 %v4047_v63  ;;  %p5303_p0 = pnand %p5302_p13, %p5296_p10 }
0x1732   :  { %v5203_v8 = vpop.eup %5202  ;;  %5208 = vpow2.f32 %v4050_v27 }
0x1733   :  { %3425 = vrot.lane.b32.xlu0 %v5203_v8, %s5331_s21 }
0x173a   :  { %v5205_v3 = vpop.eup %5204 }
0x173b   :  { %3595 = vrot.lane.b32.xlu1 %v5205_v3, %s5331_s21  ;;  %v5207_v5 = vpop.eup %5206 }
0x173c   :  { %v3419_v55 = vadd.f32 1.0, %v5207_v5  ;;  %v5209_v16 = vpop.eup %5208 }
0x173d   :  { %v3589_v28 = vadd.f32 1.0, %v5209_v16 }
0x173e   :  { %5210 = vrcp.f32 %v3419_v55 }
0x173f   :  { %5212 = vrcp.f32 %v3589_v28 }
0x1748   :  { %v5211_v29 = vpop.eup %5210 }
0x1749   :  { %v5213_v33 = vpop.eup %5212  ;;  %v3423_v39 = vmul.f32 %v5211_v29, %v6005_v11 }
0x174a   :  { %v3593_v40 = vmul.f32 %v5213_v33, %v6009_v12 }
0x17a5   :  { %v3426_v30 = vpop.permute.xlu0 %3425 }
0x17a6   :  { %v3428_v31 = vmul.f32 %v5211_v29, %v3426_v30 }
0x17a8   :  { %3430 = vrot.lane.b32.xlu0 %v3428_v31, %s5332_s22 }
0x17ad   :  { %v3596_v34 = vpop.permute.xlu1 %3595 }
0x17ae   :  { %v3598_v38 = vmul.f32 %v5213_v33, %v3596_v34 }
0x17b0   :  { %3600 = vrot.lane.b32.xlu1 %v3598_v38, %s5332_s22 }
0x181a   :  { %v3431_v18 = vpop.permute.xlu0 %3430 }
0x181b   :  { %v3433_v52 = vadd.f32 %v3431_v18, %v3423_v39 }
0x181d   :  { %5214 = vtanh.f32 %v3433_v52 }
0x1822   :  { %v3601_v35 = vpop.permute.xlu1 %3600 }
0x1823   :  { %v3603_v23 = vadd.f32 %v3601_v35, %v3593_v40 }
0x1825   :  { %5216 = vtanh.f32 %v3603_v23 }
0x1827   :  { %v5215_v42 = vpop.eup %5214 }
0x1828   :  { %3436 = vrot.lane.b32.xlu0 %v5215_v42, %s5331_s21 }
0x182f   :  { %v5217_v26 = vpop.eup %5216 }
0x1830   :  { %3606 = vrot.lane.b32.xlu1 %v5217_v26, %s5331_s21 }
0x189a   :  { %v3437_v44 = vpop.permute.xlu0 %3436 }
0x189b   :  { %v3439_v45 = vmul.f32 %v5211_v29, %v3437_v44 }
0x189d   :  { %3686 = vrot.lane.b32.xlu1 %v3439_v45, %s5332_s22 }
0x18a2   :  { %v3607_v48 = vpop.permute.xlu1 %3606 }
0x18a3   :  { %v3609_v57 = vmul.f32 %v5213_v33, %v3607_v48 }
0x18a5   :  { %3611 = vrot.lane.b32.xlu0 %v3609_v57, %s5332_s22 }
0x190f   :  { %v3687_v9 = vpop.permute.xlu1 %3686 }
0x1910   :  { %4742 = vmatmul.mubr.msk.f32.vlgmr.msra.gmra.mrb[44].mxu0 %vm254_vm2, %v3687_v9 }
0x1911   :  { %4759 = vmatprep.mubr.msk.f32.mxu0 %vm5329_vm0, %v5330_v1 }
0x1917   :  { %v3612_v62 = vpop.permute.xlu0 %3611 }
0x1918   :  { %4731 = vmatmul.mubr.msk.f32.vlgmr.msra.gmra.mrb[40].mxu1 %vm254_vm2, %v3612_v62 }
0x1919   :  { %4752 = vmatprep.mubr.msk.f32.mxu1 %vm5329_vm0, %v5330_v1 }
0x19e3   :  { %v3756_v37 = vpop.f32.mrb[44].mxu0 }
0x19e4   :  { %v4743_v54 = vpop.f32.mrb[45].mxu0 }
0x19eb   :  { %v3681_v4 = vpop.f32.mrb[40].mxu1 }
0x19ec   :  { %v3757_v6 = vadd.f32 %v3756_v37, %v3681_v4  ;;  %v4732_v7 = vpop.f32.mrb[41].mxu1 }
0x19ee   :  { %v3760_v43 = vadd.f32 %v5994_v50, %v3757_v6  ;;  %v3785_v50 = vld [vmem:[%s6113_s7] sm:$0xff] }
0x19ef   :  { %v5015_v53 = vpack.c.bf16 %v3786_v15, %v3785_v50 }
0x19f0   :  { %5218 = vtanh.f32 %v3760_v43  ;;  %v4053_v36 = vmul.f32 -1.442695, %v3760_v43 }
0x19f1   :  { %5016 = vmatpush3.bf16.msra.mxu1 %v5015_v53 }
0x19f2   :  { %5220 = vpow2.f32 %v4053_v36  ;;  %5017 = vmatprep.subr.bf16.mxu1 %v5328_v0  ;;  %v5021_v0 = vpack.c.bf16 %v3873_v20, %v3872_v19 }
0x19f4   :  { %5022 = vmatpush3.bf16.msra.mxu0 %v5021_v0 }
0x19f5   :  { %5019 = vmatpush3.bf16.msra.mxu1 %v5018_v41 }
0x19fa   :  { %v5219_v11 = vpop.eup %5218 }
0x19fb   :  { %3770 = vrot.lane.b32.xlu0 %v5219_v11, %s5331_s21 }
0x19fc   :  { %v5221_v47 = vpop.eup %5220 }
0x19fd   :  { %v3764_v12 = vadd.f32 1.0, %v5221_v47 }
0x19ff   :  { %5222 = vrcp.f32 %v3764_v12 }
0x1a09   :  { %v5223_v21 = vpop.eup %5222 }
0x1a0a   :  { %v3768_v1 = vmul.f32 %v5223_v21, %v3603_v23 }
0x1a6d   :  { %v3771_v13 = vpop.permute.xlu0 %3770 }
0x1a6e   :  { %v3773_v61 = vmul.f32 %v5223_v21, %v3771_v13 }
0x1a70   :  { %3775 = vrot.lane.b32.xlu1 %v3773_v61, %s5332_s22 }
0x1ae2   :  { %v3776_v51 = vpop.permute.xlu1 %3775 }
0x1ae3   :  { %v3778_v14 = vadd.f32 %v3776_v51, %v3768_v1 }
0x1ae5   :  { %5224 = vtanh.f32 %v3778_v14 }
0x1aef   :  { %v5225_v46 = vpop.eup %5224 }
0x1af0   :  { %3781 = vrot.lane.b32.xlu0 %v5225_v46, %s5331_s21 }
0x1b62   :  { %v3782_v49 = vpop.permute.xlu0 %3781 }
0x1b63   :  { %v3784_v2 = vmul.f32 %v5223_v21, %v3782_v49 }
0x1b65   :  { %3797 = vrot.lane.b32.xlu1 %v3784_v2, %s5332_s22 }
0x1bd7   :  { %v3798_v10 = vpop.permute.xlu1 %3797 }
0x1bd8   :  { %4753 = vmatmul.mubr.msk.f32.vlgmr.msra.gmra.mrb[42].mxu1 %vm254_vm2, %v3798_v10 }
0x1cab   :  { %v3867_v24 = vpop.f32.mrb[42].mxu1 }
0x1cac   :  { %v3868_v59 = vadd.f32 %v4054_v22, %v3867_v24  ;;  %v4754_v58 = vpop.f32.mrb[43].mxu1 }
0x1cae   :  { %v3871_v56 = vmax.f32 %v3868_v59, 0.0 }
0x1cb0   :  { %4760 = vmatmul.mubr.msk.f32.vlgmr.msra.gmra.mrb[46].mxu0 %vm3881_vm3, %v3871_v56 }
0x1d83   :  { %v3951_v60 = vpop.f32.mrb[46].mxu0 }
0x1d84   :  { %v3952_v8 = vadd.f32 %v4056_v25, %v3951_v60  ;;  %v4761_v3 = vpop.f32.mrb[47].mxu0 }
0x1d86   :  { %3956 = vst.msk [vmem:[#allocation8] sm:$0xff] %vm3955_vm4, %v3952_v8 }
0x1d87   :  { %5306 = shalt.err (!%p5303_p0)
}
0x1d88   :  { %s5307_s18 = scalar_lea.hbm %s6117_s11, 128 }
0x1d89   :  { %p5308_p1 = scmp.ne.s32.totalorder %s6117_s11, %s5307_s18  ;;  %p5311_p2 = scmp.lt.u32.totalorder %s5307_s18, %s6117_s11 }
0x1d8b   :  { %p5313_p3 = pnand %p5311_p2, %p5308_p1 }
0x1d8d   :  { %5316 = shalt.err (!%p5313_p3)
}
0x1d8e   :  { %3966 = dma.vmem_to_hbm [thread:$0]  %s3964_s23, 128, %s6117_s11, [#allocation4]  }
0x1d8f   :  { %5321 = dma.done.wait [#allocation4], 128  }
0x1d90   :  { %5322 = vsyncadd [#allocation4], 4294967168 }
0x1d91   :  { %3970 = vsyncpa [#allocation3], 1 }
0x1d92   :  { %3971 = vsyncpa [#allocation6], 1 }
0x1d93   :  { %3972 = vsyncpa [#allocation4], 1 }

</bundles_post_ra>
